<compile_context>
chip_gen: v7x
topology: tpu7x:2x2x1
jax: 0.10.0
libtpu: 0.0.40
codegen_flags: <defaults>
</compile_context>

<pallas_src>
import functools

import jax
import jax.numpy as jnp
from jax.experimental import pallas as pl
from jax.experimental.pallas import tpu as pltpu


# ----------------------------- Pallas kernel --------------------------------
def bilstm_kernel(lens_ref, emb_ref, w_in_ref, b_in_ref,
                  whh_f_ref, whh_b_ref, wout_ref, bout_ref,
                  out_ref, xp_ref):
    T, Bt, E = emb_ref.shape
    Hh = whh_f_ref.shape[0]              # hidden_dim // 2

    lens = lens_ref[...]                 # (Bt, 1) int32 -- read once, outside the loop

    # --- (1) hoisted input projection: one big MXU matmul for both directions,
    #         all timesteps; bias broadcast folded in once (outside the recurrence).
    emb_flat = emb_ref[...].reshape(T * Bt, E)
    xp_ref[...] = (jnp.dot(emb_flat, w_in_ref[...],
                           preferred_element_type=jnp.float32)
                   + b_in_ref[...]).reshape(T, Bt, 8 * Hh)

    whh_f = whh_f_ref[...]
    whh_b = whh_b_ref[...]

    # --- (2) fused-activation LSTM cell: gate layout is (i, f, o, g), so one
    #         sigmoid over [0:3Hh] and one tanh over [3Hh:4Hh].
    def cell(xg, h, c, whh):
        gates = xg + jnp.dot(h, whh, preferred_element_type=jnp.float32)   # (Bt, 4Hh)
        sg = jax.nn.sigmoid(gates[:, :3 * Hh])         # i | f | o  (one EUP call)
        g = jnp.tanh(gates[:, 3 * Hh:])                # g          (one EUP call)
        i, f, o = sg[:, :Hh], sg[:, Hh:2 * Hh], sg[:, 2 * Hh:]
        c_new = f * c + i * g
        h_new = o * jnp.tanh(c_new)
        return h_new, c_new

    z = jnp.zeros((Bt, Hh), jnp.float32)
    h_f, c_f, h_b, c_b = z, z, z, z

    # --- (3) statically unrolled recurrence (T small & static).
    for t in range(T):
        rt = T - 1 - t
        x_f = xp_ref[t]                   # (Bt, 8Hh): [:, :4Hh] fwd, [:, 4Hh:] bwd
        x_b = xp_ref[rt]

        # forward direction: freeze state once t >= length
        hn, cn = cell(x_f[:, :4 * Hh], h_f, c_f, whh_f)
        m = t < lens
        h_f = jnp.where(m, hn, h_f)
        c_f = jnp.where(m, cn, c_f)

        # backward direction: reversed time, skip padded tail
        hn, cn = cell(x_b[:, 4 * Hh:], h_b, c_b, whh_b)
        m = rt < lens
        h_b = jnp.where(m, hn, h_b)
        c_b = jnp.where(m, cn, c_b)

    hidden = jnp.concatenate([h_f, h_b], axis=-1)       # (Bt, 2*Hh)
    out_ref[...] = (jnp.dot(hidden, wout_ref[...],
                            preferred_element_type=jnp.float32)
                    + bout_ref[...])                    # lane-dense (Bt, 128) store


# ------------------------------ JAX wrapper ----------------------------------
def _ifgo_to_ifog(w):
    """Permute PyTorch gate order (i, f, g, o) -> (i, f, o, g) along the last axis."""
    i, f, g, o = jnp.split(w, 4, axis=-1)
    return jnp.concatenate([i, f, o, g], axis=-1)


@functools.partial(jax.jit, static_argnames=("num_labels", "batch_tile", "label_pad"))
def bilstm_forward(input_ids, input_lengths, params, *, num_labels,
                   batch_tile=8, label_pad=128):
    B, T = input_ids.shape
    E = params["embedding"].shape[1]
    Hh = params["whh_f"].shape[0]

    # Embedding gather (glue, plain JAX), fed to the kernel time-major.
    emb = params["embedding"][input_ids].astype(jnp.float32)      # (B, T, E)
    emb_tbe = jnp.transpose(emb, (1, 0, 2))                       # (T, B, E)

    # Pad batch to a sublane multiple; padded rows get length 0 (state stays zero)
    # and are sliced off after the call.
    B_pad = pl.cdiv(B, batch_tile) * batch_tile
    emb_tbe = jnp.pad(emb_tbe, ((0, 0), (0, B_pad - B), (0, 0)))
    lens = jnp.pad(input_lengths.astype(jnp.int32),
                   (0, B_pad - B)).reshape(B_pad, 1)

    # Gate reorder + fuse fwd/bwd input projections into one (E, 8*Hh) weight,
    # biases (b_ih + b_hh already folded) into one (1, 8*Hh) row.
    w_in = jnp.concatenate([_ifgo_to_ifog(params["wih_f"]),
                            _ifgo_to_ifog(params["wih_b"])], axis=1)
    b_in = jnp.concatenate([_ifgo_to_ifog(params["b_f"]),
                            _ifgo_to_ifog(params["b_b"])], axis=1)
    whh_f = _ifgo_to_ifog(params["whh_f"])
    whh_b = _ifgo_to_ifog(params["whh_b"])

    # Lane-pad the output head to 128 so the final store is unmasked; padded
    # logit columns are zero (zero weight columns) and sliced off afterwards.
    L_pad = max(label_pad, num_labels)
    wout = jnp.pad(params["wout"], ((0, 0), (0, L_pad - num_labels)))
    bout = jnp.pad(params["bout"], ((0, 0), (0, L_pad - num_labels)))

    grid = (B_pad // batch_tile,)

    def wspec(shape):   # full-array (un-tiled) weight spec
        return pl.BlockSpec(shape, lambda i: (0,) * len(shape))

    out = pl.pallas_call(
        bilstm_kernel,
        out_shape=jax.ShapeDtypeStruct((B_pad, L_pad), jnp.float32),
        grid=grid,
        in_specs=[
            pl.BlockSpec((batch_tile, 1), lambda i: (i, 0)),        # lens
            pl.BlockSpec((T, batch_tile, E), lambda i: (0, i, 0)),  # emb (time-major)
            wspec((E, 8 * Hh)),                                     # fused W_ih
            wspec((1, 8 * Hh)),                                     # fused bias
            wspec((Hh, 4 * Hh)),                                    # W_hh fwd
            wspec((Hh, 4 * Hh)),                                    # W_hh bwd
            wspec((2 * Hh, L_pad)),                                 # W_out (lane-padded)
            wspec((1, L_pad)),                                      # b_out (lane-padded)
        ],
        out_specs=pl.BlockSpec((batch_tile, L_pad), lambda i: (i, 0)),
        scratch_shapes=[pltpu.VMEM((T, batch_tile, 8 * Hh), jnp.float32)],
        compiler_params=pltpu.CompilerParams(
            dimension_semantics=("parallel",),
            vmem_limit_bytes=32 * 1024 * 1024),
    )(lens, emb_tbe, w_in, b_in, whh_f, whh_b, wout, bout)

    return out[:B, :num_labels]


# --------------------------- pure-JAX reference -------------------------------
def bilstm_reference(input_ids, input_lengths, params, num_labels):
    emb = params["embedding"][input_ids].astype(jnp.float32)  # (B, T, E)
    B, T, _E = emb.shape
    Hh = params["whh_f"].shape[0]
    lens = input_lengths.astype(jnp.int32).reshape(B, 1)

    def cell(x, h, c, wih, whh, b):     # PyTorch gate order (i, f, g, o)
        gates = x @ wih + h @ whh + b
        i = jax.nn.sigmoid(gates[:, 0:Hh])
        f = jax.nn.sigmoid(gates[:, Hh:2 * Hh])
        g = jnp.tanh(gates[:, 2 * Hh:3 * Hh])
        o = jax.nn.sigmoid(gates[:, 3 * Hh:4 * Hh])
        c_new = f * c + i * g
        return o * jnp.tanh(c_new), c_new

    h_f = c_f = h_b = c_b = jnp.zeros((B, Hh), jnp.float32)
    for t in range(T):
        hn, cn = cell(emb[:, t], h_f, c_f, params["wih_f"], params["whh_f"], params["b_f"])
        m = t < lens
        h_f = jnp.where(m, hn, h_f)
        c_f = jnp.where(m, cn, c_f)

        rt = T - 1 - t
        hn, cn = cell(emb[:, rt], h_b, c_b, params["wih_b"], params["whh_b"], params["b_b"])
        m = rt < lens
        h_b = jnp.where(m, hn, h_b)
        c_b = jnp.where(m, cn, c_b)

    hidden = jnp.concatenate([h_f, h_b], axis=-1)
    return hidden @ params["wout"] + params["bout"]


# --------------------------------- main ---------------------------------------
if __name__ == "__main__":
    vocab_size = 50
    embedding_dim = 32
    hidden_dim = 32          # per-direction hidden = 16
    num_labels = 3
    B, T = 4, 8
    Hh = hidden_dim // 2

    key = jax.random.PRNGKey(0)
    ks = jax.random.split(key, 12)
    s = 0.1
    params = {
        "embedding": jax.random.normal(ks[0], (vocab_size, embedding_dim), jnp.float32) * s,
        # PyTorch gate order (i, f, g, o); bias_ih + bias_hh folded into one bias.
        "wih_f": jax.random.normal(ks[1], (embedding_dim, 4 * Hh), jnp.float32) * s,
        "whh_f": jax.random.normal(ks[2], (Hh, 4 * Hh), jnp.float32) * s,
        "b_f":   jax.random.normal(ks[3], (1, 4 * Hh), jnp.float32) * s,
        "wih_b": jax.random.normal(ks[4], (embedding_dim, 4 * Hh), jnp.float32) * s,
        "whh_b": jax.random.normal(ks[5], (Hh, 4 * Hh), jnp.float32) * s,
        "b_b":   jax.random.normal(ks[6], (1, 4 * Hh), jnp.float32) * s,
        "wout":  jax.random.normal(ks[7], (hidden_dim, num_labels), jnp.float32) * s,
        "bout":  jax.random.normal(ks[8], (1, num_labels), jnp.float32) * s,
    }

    input_ids = jax.random.randint(ks[9], (B, T), 0, vocab_size, dtype=jnp.int32)
    input_lengths = jnp.array([8, 5, 3, 8], dtype=jnp.int32)

    logits = bilstm_forward(input_ids, input_lengths, params, num_labels=num_labels)
    logits = jax.block_until_ready(logits)

    ref = bilstm_reference(input_ids, input_lengths, params, num_labels)
    assert logits.shape == (B, num_labels)
    assert jnp.allclose(logits, ref, atol=1e-4, rtol=1e-4), (logits, ref)

    print("KERNEL_OK")
</pallas_src>

<mosaic_0001>
module attributes {stable_mosaic.version = 11 : i64} {
  func.func @bilstm_kernel(%arg0: i32, %arg1: memref<8x1xi32, #tpu.memory_space<vmem>>, %arg2: memref<8x8x32xf32, #tpu.memory_space<vmem>>, %arg3: memref<32x128xf32, #tpu.memory_space<vmem>>, %arg4: memref<1x128xf32, #tpu.memory_space<vmem>>, %arg5: memref<16x64xf32, #tpu.memory_space<vmem>>, %arg6: memref<16x64xf32, #tpu.memory_space<vmem>>, %arg7: memref<32x128xf32, #tpu.memory_space<vmem>>, %arg8: memref<1x128xf32, #tpu.memory_space<vmem>>, %arg9: memref<8x128xf32, #tpu.memory_space<vmem>>, %arg10: memref<8x8x128xf32, #tpu.memory_space<vmem>>) attributes {dimension_semantics = [#tpu.dimension_semantics<parallel>], iteration_bounds = array<i64: 1>, scalar_prefetch = 0 : i64, scratch_operands = 1 : i64, tpu.core_type = #tpu.core_type<tc>, window_params = [{transform_indices = @transform_0, window_bounds = array<i64: 8, 1>}, {transform_indices = @transform_1, window_bounds = array<i64: 8, 8, 32>}, {pipeline_mode = #tpu.pipeline_mode<synchronous>, transform_indices = @transform_2, window_bounds = array<i64: 32, 128>}, {pipeline_mode = #tpu.pipeline_mode<synchronous>, transform_indices = @transform_3, window_bounds = array<i64: 1, 128>}, {pipeline_mode = #tpu.pipeline_mode<synchronous>, transform_indices = @transform_4, window_bounds = array<i64: 16, 64>}, {pipeline_mode = #tpu.pipeline_mode<synchronous>, transform_indices = @transform_5, window_bounds = array<i64: 16, 64>}, {pipeline_mode = #tpu.pipeline_mode<synchronous>, transform_indices = @transform_6, window_bounds = array<i64: 32, 128>}, {pipeline_mode = #tpu.pipeline_mode<synchronous>, transform_indices = @transform_7, window_bounds = array<i64: 1, 128>}, {transform_indices = @transform_8, window_bounds = array<i64: 8, 128>}]} {
    %c0 = arith.constant 0 : index
    %c0_0 = arith.constant 0 : index
    %0 = vector.load %arg1[%c0, %c0_0] : memref<8x1xi32, #tpu.memory_space<vmem>>, vector<8x1xi32>
    %c0_1 = arith.constant 0 : index
    %c0_2 = arith.constant 0 : index
    %c0_3 = arith.constant 0 : index
    %1 = vector.load %arg2[%c0_1, %c0_2, %c0_3] : memref<8x8x32xf32, #tpu.memory_space<vmem>>, vector<8x8x32xf32>
    %2 = vector.shape_cast %1 : vector<8x8x32xf32> to vector<64x32xf32>
    %c0_4 = arith.constant 0 : index
    %c0_5 = arith.constant 0 : index
    %3 = vector.load %arg3[%c0_4, %c0_5] : memref<32x128xf32, #tpu.memory_space<vmem>>, vector<32x128xf32>
    %cst = arith.constant dense<0.000000e+00> : vector<64x128xf32>
    %4 = tpu.matmul %2, %3, %cst {dimension_numbers = #tpu.dot_dimension_numbers<[1], [0], [0], [1], [0, 0, 1, 1], [], []>} : vector<64x32xf32>, vector<32x128xf32>, vector<64x128xf32> -> vector<64x128xf32>
    %c0_6 = arith.constant 0 : index
    %c0_7 = arith.constant 0 : index
    %5 = vector.load %arg4[%c0_6, %c0_7] : memref<1x128xf32, #tpu.memory_space<vmem>>, vector<1x128xf32>
    %6 = vector.broadcast %5 : vector<1x128xf32> to vector<64x128xf32>
    %7 = arith.addf %4, %6 : vector<64x128xf32>
    %8 = vector.shape_cast %7 : vector<64x128xf32> to vector<8x8x128xf32>
    %c0_8 = arith.constant 0 : index
    %c0_9 = arith.constant 0 : index
    %c0_10 = arith.constant 0 : index
    %9 = vector.load %arg10[%c0_8, %c0_9, %c0_10] : memref<8x8x128xf32, #tpu.memory_space<vmem>>, vector<8x8x128xf32>
    tpu.vector_store %arg10[%c0_8, %c0_9, %c0_10], %8 {strides = array<i32>} : memref<8x8x128xf32, #tpu.memory_space<vmem>>, vector<8x8x128xf32>,
    %c0_11 = arith.constant 0 : index
    %c0_12 = arith.constant 0 : index
    %10 = vector.load %arg5[%c0_11, %c0_12] : memref<16x64xf32, #tpu.memory_space<vmem>>, vector<16x64xf32>
    %c0_13 = arith.constant 0 : index
    %c0_14 = arith.constant 0 : index
    %11 = vector.load %arg6[%c0_13, %c0_14] : memref<16x64xf32, #tpu.memory_space<vmem>>, vector<16x64xf32>
    %cst_15 = arith.constant 0.000000e+00 : f32
    %12 = vector.broadcast %cst_15 : f32 to vector<8x16xf32>
    %c0_16 = arith.constant 0 : index
    %c0_17 = arith.constant 0 : index
    %c0_18 = arith.constant 0 : index
    %13 = vector.load %arg10[%c0_16, %c0_17, %c0_18] : memref<8x8x128xf32, #tpu.memory_space<vmem>>, vector<1x8x128xf32>
    %14 = vector.shape_cast %13 : vector<1x8x128xf32> to vector<8x128xf32>
    %c7 = arith.constant 7 : index
    %c0_19 = arith.constant 0 : index
    %c0_20 = arith.constant 0 : index
    %15 = vector.load %arg10[%c7, %c0_19, %c0_20] : memref<8x8x128xf32, #tpu.memory_space<vmem>>, vector<1x8x128xf32>
    %16 = vector.shape_cast %15 : vector<1x8x128xf32> to vector<8x128xf32>
    %17 = vector.extract_strided_slice %14 {offsets = [0, 0], sizes = [8, 64], strides = [1, 1]} : vector<8x128xf32> to vector<8x64xf32>
    %cst_21 = arith.constant dense<0.000000e+00> : vector<8x64xf32>
    %18 = tpu.matmul %12, %10, %cst_21 {dimension_numbers = #tpu.dot_dimension_numbers<[1], [0], [0], [1], [0, 0, 1, 1], [], []>} : vector<8x16xf32>, vector<16x64xf32>, vector<8x64xf32> -> vector<8x64xf32>
    %19 = arith.addf %17, %18 : vector<8x64xf32>
    %20 = vector.extract_strided_slice %19 {offsets = [0, 0], sizes = [8, 48], strides = [1, 1]} : vector<8x64xf32> to vector<8x48xf32>
    %21 = arith.negf %20 : vector<8x48xf32>
    %22 = math.exp %21 : vector<8x48xf32>
    %cst_22 = arith.constant 1.000000e+00 : f32
    %23 = vector.broadcast %cst_22 : f32 to vector<8x48xf32>
    %24 = arith.addf %23, %22 : vector<8x48xf32>
    %25 = arith.divf %23, %24 : vector<8x48xf32>
    %26 = vector.extract_strided_slice %19 {offsets = [0, 48], sizes = [8, 16], strides = [1, 1]} : vector<8x64xf32> to vector<8x16xf32>
    %27 = math.tanh %26 : vector<8x16xf32>
    %28 = vector.extract_strided_slice %25 {offsets = [0, 0], sizes = [8, 16], strides = [1, 1]} : vector<8x48xf32> to vector<8x16xf32>
    %29 = vector.extract_strided_slice %25 {offsets = [0, 16], sizes = [8, 16], strides = [1, 1]} : vector<8x48xf32> to vector<8x16xf32>
    %30 = vector.extract_strided_slice %25 {offsets = [0, 32], sizes = [8, 16], strides = [1, 1]} : vector<8x48xf32> to vector<8x16xf32>
    %31 = arith.mulf %29, %12 : vector<8x16xf32>
    %32 = arith.mulf %28, %27 : vector<8x16xf32>
    %33 = arith.addf %31, %32 : vector<8x16xf32>
    %34 = math.tanh %33 : vector<8x16xf32>
    %35 = arith.mulf %30, %34 : vector<8x16xf32>
    %c0_i32 = arith.constant 0 : i32
    %36 = vector.broadcast %c0_i32 : i32 to vector<8x1xi32>
    %37 = arith.cmpi sgt, %0, %36 : vector<8x1xi32>
    %38 = vector.shape_cast %37 : vector<8x1xi1> to vector<8x1xi1>
    %39 = vector.broadcast %38 : vector<8x1xi1> to vector<8x16xi1>
    %40 = arith.select %39, %35, %12 : vector<8x16xi1>, vector<8x16xf32>
    %41 = vector.shape_cast %37 : vector<8x1xi1> to vector<8x1xi1>
    %42 = vector.broadcast %41 : vector<8x1xi1> to vector<8x16xi1>
    %43 = arith.select %42, %33, %12 : vector<8x16xi1>, vector<8x16xf32>
    %44 = vector.extract_strided_slice %16 {offsets = [0, 64], sizes = [8, 64], strides = [1, 1]} : vector<8x128xf32> to vector<8x64xf32>
    %cst_23 = arith.constant dense<0.000000e+00> : vector<8x64xf32>
    %45 = tpu.matmul %12, %11, %cst_23 {dimension_numbers = #tpu.dot_dimension_numbers<[1], [0], [0], [1], [0, 0, 1, 1], [], []>} : vector<8x16xf32>, vector<16x64xf32>, vector<8x64xf32> -> vector<8x64xf32>
    %46 = arith.addf %44, %45 : vector<8x64xf32>
    %47 = vector.extract_strided_slice %46 {offsets = [0, 0], sizes = [8, 48], strides = [1, 1]} : vector<8x64xf32> to vector<8x48xf32>
    %48 = arith.negf %47 : vector<8x48xf32>
    %49 = math.exp %48 : vector<8x48xf32>
    %cst_24 = arith.constant 1.000000e+00 : f32
    %50 = vector.broadcast %cst_24 : f32 to vector<8x48xf32>
    %51 = arith.addf %50, %49 : vector<8x48xf32>
    %52 = arith.divf %50, %51 : vector<8x48xf32>
    %53 = vector.extract_strided_slice %46 {offsets = [0, 48], sizes = [8, 16], strides = [1, 1]} : vector<8x64xf32> to vector<8x16xf32>
    %54 = math.tanh %53 : vector<8x16xf32>
    %55 = vector.extract_strided_slice %52 {offsets = [0, 0], sizes = [8, 16], strides = [1, 1]} : vector<8x48xf32> to vector<8x16xf32>
    %56 = vector.extract_strided_slice %52 {offsets = [0, 16], sizes = [8, 16], strides = [1, 1]} : vector<8x48xf32> to vector<8x16xf32>
    %57 = vector.extract_strided_slice %52 {offsets = [0, 32], sizes = [8, 16], strides = [1, 1]} : vector<8x48xf32> to vector<8x16xf32>
    %58 = arith.mulf %56, %12 : vector<8x16xf32>
    %59 = arith.mulf %55, %54 : vector<8x16xf32>
    %60 = arith.addf %58, %59 : vector<8x16xf32>
    %61 = math.tanh %60 : vector<8x16xf32>
    %62 = arith.mulf %57, %61 : vector<8x16xf32>
    %c7_i32 = arith.constant 7 : i32
    %63 = vector.broadcast %c7_i32 : i32 to vector<8x1xi32>
    %64 = arith.cmpi sgt, %0, %63 : vector<8x1xi32>
    %65 = vector.shape_cast %64 : vector<8x1xi1> to vector<8x1xi1>
    %66 = vector.broadcast %65 : vector<8x1xi1> to vector<8x16xi1>
    %67 = arith.select %66, %62, %12 : vector<8x16xi1>, vector<8x16xf32>
    %68 = vector.shape_cast %64 : vector<8x1xi1> to vector<8x1xi1>
    %69 = vector.broadcast %68 : vector<8x1xi1> to vector<8x16xi1>
    %70 = arith.select %69, %60, %12 : vector<8x16xi1>, vector<8x16xf32>
    %c1 = arith.constant 1 : index
    %c0_25 = arith.constant 0 : index
    %c0_26 = arith.constant 0 : index
    %71 = vector.load %arg10[%c1, %c0_25, %c0_26] : memref<8x8x128xf32, #tpu.memory_space<vmem>>, vector<1x8x128xf32>
    %72 = vector.shape_cast %71 : vector<1x8x128xf32> to vector<8x128xf32>
    %c6 = arith.constant 6 : index
    %c0_27 = arith.constant 0 : index
    %c0_28 = arith.constant 0 : index
    %73 = vector.load %arg10[%c6, %c0_27, %c0_28] : memref<8x8x128xf32, #tpu.memory_space<vmem>>, vector<1x8x128xf32>
    %74 = vector.shape_cast %73 : vector<1x8x128xf32> to vector<8x128xf32>
    %75 = vector.extract_strided_slice %72 {offsets = [0, 0], sizes = [8, 64], strides = [1, 1]} : vector<8x128xf32> to vector<8x64xf32>
    %cst_29 = arith.constant dense<0.000000e+00> : vector<8x64xf32>
    %76 = tpu.matmul %40, %10, %cst_29 {dimension_numbers = #tpu.dot_dimension_numbers<[1], [0], [0], [1], [0, 0, 1, 1], [], []>} : vector<8x16xf32>, vector<16x64xf32>, vector<8x64xf32> -> vector<8x64xf32>
    %77 = arith.addf %75, %76 : vector<8x64xf32>
    %78 = vector.extract_strided_slice %77 {offsets = [0, 0], sizes = [8, 48], strides = [1, 1]} : vector<8x64xf32> to vector<8x48xf32>
    %79 = arith.negf %78 : vector<8x48xf32>
    %80 = math.exp %79 : vector<8x48xf32>
    %cst_30 = arith.constant 1.000000e+00 : f32
    %81 = vector.broadcast %cst_30 : f32 to vector<8x48xf32>
    %82 = arith.addf %81, %80 : vector<8x48xf32>
    %83 = arith.divf %81, %82 : vector<8x48xf32>
    %84 = vector.extract_strided_slice %77 {offsets = [0, 48], sizes = [8, 16], strides = [1, 1]} : vector<8x64xf32> to vector<8x16xf32>
    %85 = math.tanh %84 : vector<8x16xf32>
    %86 = vector.extract_strided_slice %83 {offsets = [0, 0], sizes = [8, 16], strides = [1, 1]} : vector<8x48xf32> to vector<8x16xf32>
    %87 = vector.extract_strided_slice %83 {offsets = [0, 16], sizes = [8, 16], strides = [1, 1]} : vector<8x48xf32> to vector<8x16xf32>
    %88 = vector.extract_strided_slice %83 {offsets = [0, 32], sizes = [8, 16], strides = [1, 1]} : vector<8x48xf32> to vector<8x16xf32>
    %89 = arith.mulf %87, %43 : vector<8x16xf32>
    %90 = arith.mulf %86, %85 : vector<8x16xf32>
    %91 = arith.addf %89, %90 : vector<8x16xf32>
    %92 = math.tanh %91 : vector<8x16xf32>
    %93 = arith.mulf %88, %92 : vector<8x16xf32>
    %c1_i32 = arith.constant 1 : i32
    %94 = vector.broadcast %c1_i32 : i32 to vector<8x1xi32>
    %95 = arith.cmpi sgt, %0, %94 : vector<8x1xi32>
    %96 = vector.shape_cast %95 : vector<8x1xi1> to vector<8x1xi1>
    %97 = vector.broadcast %96 : vector<8x1xi1> to vector<8x16xi1>
    %98 = arith.select %97, %93, %40 : vector<8x16xi1>, vector<8x16xf32>
    %99 = vector.shape_cast %95 : vector<8x1xi1> to vector<8x1xi1>
    %100 = vector.broadcast %99 : vector<8x1xi1> to vector<8x16xi1>
    %101 = arith.select %100, %91, %43 : vector<8x16xi1>, vector<8x16xf32>
    %102 = vector.extract_strided_slice %74 {offsets = [0, 64], sizes = [8, 64], strides = [1, 1]} : vector<8x128xf32> to vector<8x64xf32>
    %cst_31 = arith.constant dense<0.000000e+00> : vector<8x64xf32>
    %103 = tpu.matmul %67, %11, %cst_31 {dimension_numbers = #tpu.dot_dimension_numbers<[1], [0], [0], [1], [0, 0, 1, 1], [], []>} : vector<8x16xf32>, vector<16x64xf32>, vector<8x64xf32> -> vector<8x64xf32>
    %104 = arith.addf %102, %103 : vector<8x64xf32>
    %105 = vector.extract_strided_slice %104 {offsets = [0, 0], sizes = [8, 48], strides = [1, 1]} : vector<8x64xf32> to vector<8x48xf32>
    %106 = arith.negf %105 : vector<8x48xf32>
    %107 = math.exp %106 : vector<8x48xf32>
    %cst_32 = arith.constant 1.000000e+00 : f32
    %108 = vector.broadcast %cst_32 : f32 to vector<8x48xf32>
    %109 = arith.addf %108, %107 : vector<8x48xf32>
    %110 = arith.divf %108, %109 : vector<8x48xf32>
    %111 = vector.extract_strided_slice %104 {offsets = [0, 48], sizes = [8, 16], strides = [1, 1]} : vector<8x64xf32> to vector<8x16xf32>
    %112 = math.tanh %111 : vector<8x16xf32>
    %113 = vector.extract_strided_slice %110 {offsets = [0, 0], sizes = [8, 16], strides = [1, 1]} : vector<8x48xf32> to vector<8x16xf32>
    %114 = vector.extract_strided_slice %110 {offsets = [0, 16], sizes = [8, 16], strides = [1, 1]} : vector<8x48xf32> to vector<8x16xf32>
    %115 = vector.extract_strided_slice %110 {offsets = [0, 32], sizes = [8, 16], strides = [1, 1]} : vector<8x48xf32> to vector<8x16xf32>
    %116 = arith.mulf %114, %70 : vector<8x16xf32>
    %117 = arith.mulf %113, %112 : vector<8x16xf32>
    %118 = arith.addf %116, %117 : vector<8x16xf32>
    %119 = math.tanh %118 : vector<8x16xf32>
    %120 = arith.mulf %115, %119 : vector<8x16xf32>
    %c6_i32 = arith.constant 6 : i32
    %121 = vector.broadcast %c6_i32 : i32 to vector<8x1xi32>
    %122 = arith.cmpi sgt, %0, %121 : vector<8x1xi32>
    %123 = vector.shape_cast %122 : vector<8x1xi1> to vector<8x1xi1>
    %124 = vector.broadcast %123 : vector<8x1xi1> to vector<8x16xi1>
    %125 = arith.select %124, %120, %67 : vector<8x16xi1>, vector<8x16xf32>
    %126 = vector.shape_cast %122 : vector<8x1xi1> to vector<8x1xi1>
    %127 = vector.broadcast %126 : vector<8x1xi1> to vector<8x16xi1>
    %128 = arith.select %127, %118, %70 : vector<8x16xi1>, vector<8x16xf32>
    %c2 = arith.constant 2 : index
    %c0_33 = arith.constant 0 : index
    %c0_34 = arith.constant 0 : index
    %129 = vector.load %arg10[%c2, %c0_33, %c0_34] : memref<8x8x128xf32, #tpu.memory_space<vmem>>, vector<1x8x128xf32>
    %130 = vector.shape_cast %129 : vector<1x8x128xf32> to vector<8x128xf32>
    %c5 = arith.constant 5 : index
    %c0_35 = arith.constant 0 : index
    %c0_36 = arith.constant 0 : index
    %131 = vector.load %arg10[%c5, %c0_35, %c0_36] : memref<8x8x128xf32, #tpu.memory_space<vmem>>, vector<1x8x128xf32>
    %132 = vector.shape_cast %131 : vector<1x8x128xf32> to vector<8x128xf32>
    %133 = vector.extract_strided_slice %130 {offsets = [0, 0], sizes = [8, 64], strides = [1, 1]} : vector<8x128xf32> to vector<8x64xf32>
    %cst_37 = arith.constant dense<0.000000e+00> : vector<8x64xf32>
    %134 = tpu.matmul %98, %10, %cst_37 {dimension_numbers = #tpu.dot_dimension_numbers<[1], [0], [0], [1], [0, 0, 1, 1], [], []>} : vector<8x16xf32>, vector<16x64xf32>, vector<8x64xf32> -> vector<8x64xf32>
    %135 = arith.addf %133, %134 : vector<8x64xf32>
    %136 = vector.extract_strided_slice %135 {offsets = [0, 0], sizes = [8, 48], strides = [1, 1]} : vector<8x64xf32> to vector<8x48xf32>
    %137 = arith.negf %136 : vector<8x48xf32>
    %138 = math.exp %137 : vector<8x48xf32>
    %cst_38 = arith.constant 1.000000e+00 : f32
    %139 = vector.broadcast %cst_38 : f32 to vector<8x48xf32>
    %140 = arith.addf %139, %138 : vector<8x48xf32>
    %141 = arith.divf %139, %140 : vector<8x48xf32>
    %142 = vector.extract_strided_slice %135 {offsets = [0, 48], sizes = [8, 16], strides = [1, 1]} : vector<8x64xf32> to vector<8x16xf32>
    %143 = math.tanh %142 : vector<8x16xf32>
    %144 = vector.extract_strided_slice %141 {offsets = [0, 0], sizes = [8, 16], strides = [1, 1]} : vector<8x48xf32> to vector<8x16xf32>
    %145 = vector.extract_strided_slice %141 {offsets = [0, 16], sizes = [8, 16], strides = [1, 1]} : vector<8x48xf32> to vector<8x16xf32>
    %146 = vector.extract_strided_slice %141 {offsets = [0, 32], sizes = [8, 16], strides = [1, 1]} : vector<8x48xf32> to vector<8x16xf32>
    %147 = arith.mulf %145, %101 : vector<8x16xf32>
    %148 = arith.mulf %144, %143 : vector<8x16xf32>
    %149 = arith.addf %147, %148 : vector<8x16xf32>
    %150 = math.tanh %149 : vector<8x16xf32>
    %151 = arith.mulf %146, %150 : vector<8x16xf32>
    %c2_i32 = arith.constant 2 : i32
    %152 = vector.broadcast %c2_i32 : i32 to vector<8x1xi32>
    %153 = arith.cmpi sgt, %0, %152 : vector<8x1xi32>
    %154 = vector.shape_cast %153 : vector<8x1xi1> to vector<8x1xi1>
    %155 = vector.broadcast %154 : vector<8x1xi1> to vector<8x16xi1>
    %156 = arith.select %155, %151, %98 : vector<8x16xi1>, vector<8x16xf32>
    %157 = vector.shape_cast %153 : vector<8x1xi1> to vector<8x1xi1>
    %158 = vector.broadcast %157 : vector<8x1xi1> to vector<8x16xi1>
    %159 = arith.select %158, %149, %101 : vector<8x16xi1>, vector<8x16xf32>
    %160 = vector.extract_strided_slice %132 {offsets = [0, 64], sizes = [8, 64], strides = [1, 1]} : vector<8x128xf32> to vector<8x64xf32>
    %cst_39 = arith.constant dense<0.000000e+00> : vector<8x64xf32>
    %161 = tpu.matmul %125, %11, %cst_39 {dimension_numbers = #tpu.dot_dimension_numbers<[1], [0], [0], [1], [0, 0, 1, 1], [], []>} : vector<8x16xf32>, vector<16x64xf32>, vector<8x64xf32> -> vector<8x64xf32>
    %162 = arith.addf %160, %161 : vector<8x64xf32>
    %163 = vector.extract_strided_slice %162 {offsets = [0, 0], sizes = [8, 48], strides = [1, 1]} : vector<8x64xf32> to vector<8x48xf32>
    %164 = arith.negf %163 : vector<8x48xf32>
    %165 = math.exp %164 : vector<8x48xf32>
    %cst_40 = arith.constant 1.000000e+00 : f32
    %166 = vector.broadcast %cst_40 : f32 to vector<8x48xf32>
    %167 = arith.addf %166, %165 : vector<8x48xf32>
    %168 = arith.divf %166, %167 : vector<8x48xf32>
    %169 = vector.extract_strided_slice %162 {offsets = [0, 48], sizes = [8, 16], strides = [1, 1]} : vector<8x64xf32> to vector<8x16xf32>
    %170 = math.tanh %169 : vector<8x16xf32>
    %171 = vector.extract_strided_slice %168 {offsets = [0, 0], sizes = [8, 16], strides = [1, 1]} : vector<8x48xf32> to vector<8x16xf32>
    %172 = vector.extract_strided_slice %168 {offsets = [0, 16], sizes = [8, 16], strides = [1, 1]} : vector<8x48xf32> to vector<8x16xf32>
    %173 = vector.extract_strided_slice %168 {offsets = [0, 32], sizes = [8, 16], strides = [1, 1]} : vector<8x48xf32> to vector<8x16xf32>
    %174 = arith.mulf %172, %128 : vector<8x16xf32>
    %175 = arith.mulf %171, %170 : vector<8x16xf32>
    %176 = arith.addf %174, %175 : vector<8x16xf32>
    %177 = math.tanh %176 : vector<8x16xf32>
    %178 = arith.mulf %173, %177 : vector<8x16xf32>
    %c5_i32 = arith.constant 5 : i32
    %179 = vector.broadcast %c5_i32 : i32 to vector<8x1xi32>
    %180 = arith.cmpi sgt, %0, %179 : vector<8x1xi32>
    %181 = vector.shape_cast %180 : vector<8x1xi1> to vector<8x1xi1>
    %182 = vector.broadcast %181 : vector<8x1xi1> to vector<8x16xi1>
    %183 = arith.select %182, %178, %125 : vector<8x16xi1>, vector<8x16xf32>
    %184 = vector.shape_cast %180 : vector<8x1xi1> to vector<8x1xi1>
    %185 = vector.broadcast %184 : vector<8x1xi1> to vector<8x16xi1>
    %186 = arith.select %185, %176, %128 : vector<8x16xi1>, vector<8x16xf32>
    %c3 = arith.constant 3 : index
    %c0_41 = arith.constant 0 : index
    %c0_42 = arith.constant 0 : index
    %187 = vector.load %arg10[%c3, %c0_41, %c0_42] : memref<8x8x128xf32, #tpu.memory_space<vmem>>, vector<1x8x128xf32>
    %188 = vector.shape_cast %187 : vector<1x8x128xf32> to vector<8x128xf32>
    %c4 = arith.constant 4 : index
    %c0_43 = arith.constant 0 : index
    %c0_44 = arith.constant 0 : index
    %189 = vector.load %arg10[%c4, %c0_43, %c0_44] : memref<8x8x128xf32, #tpu.memory_space<vmem>>, vector<1x8x128xf32>
    %190 = vector.shape_cast %189 : vector<1x8x128xf32> to vector<8x128xf32>
    %191 = vector.extract_strided_slice %188 {offsets = [0, 0], sizes = [8, 64], strides = [1, 1]} : vector<8x128xf32> to vector<8x64xf32>
    %cst_45 = arith.constant dense<0.000000e+00> : vector<8x64xf32>
    %192 = tpu.matmul %156, %10, %cst_45 {dimension_numbers = #tpu.dot_dimension_numbers<[1], [0], [0], [1], [0, 0, 1, 1], [], []>} : vector<8x16xf32>, vector<16x64xf32>, vector<8x64xf32> -> vector<8x64xf32>
    %193 = arith.addf %191, %192 : vector<8x64xf32>
    %194 = vector.extract_strided_slice %193 {offsets = [0, 0], sizes = [8, 48], strides = [1, 1]} : vector<8x64xf32> to vector<8x48xf32>
    %195 = arith.negf %194 : vector<8x48xf32>
    %196 = math.exp %195 : vector<8x48xf32>
    %cst_46 = arith.constant 1.000000e+00 : f32
    %197 = vector.broadcast %cst_46 : f32 to vector<8x48xf32>
    %198 = arith.addf %197, %196 : vector<8x48xf32>
    %199 = arith.divf %197, %198 : vector<8x48xf32>
    %200 = vector.extract_strided_slice %193 {offsets = [0, 48], sizes = [8, 16], strides = [1, 1]} : vector<8x64xf32> to vector<8x16xf32>
    %201 = math.tanh %200 : vector<8x16xf32>
    %202 = vector.extract_strided_slice %199 {offsets = [0, 0], sizes = [8, 16], strides = [1, 1]} : vector<8x48xf32> to vector<8x16xf32>
    %203 = vector.extract_strided_slice %199 {offsets = [0, 16], sizes = [8, 16], strides = [1, 1]} : vector<8x48xf32> to vector<8x16xf32>
    %204 = vector.extract_strided_slice %199 {offsets = [0, 32], sizes = [8, 16], strides = [1, 1]} : vector<8x48xf32> to vector<8x16xf32>
    %205 = arith.mulf %203, %159 : vector<8x16xf32>
    %206 = arith.mulf %202, %201 : vector<8x16xf32>
    %207 = arith.addf %205, %206 : vector<8x16xf32>
    %208 = math.tanh %207 : vector<8x16xf32>
    %209 = arith.mulf %204, %208 : vector<8x16xf32>
    %c3_i32 = arith.constant 3 : i32
    %210 = vector.broadcast %c3_i32 : i32 to vector<8x1xi32>
    %211 = arith.cmpi sgt, %0, %210 : vector<8x1xi32>
    %212 = vector.shape_cast %211 : vector<8x1xi1> to vector<8x1xi1>
    %213 = vector.broadcast %212 : vector<8x1xi1> to vector<8x16xi1>
    %214 = arith.select %213, %209, %156 : vector<8x16xi1>, vector<8x16xf32>
    %215 = vector.shape_cast %211 : vector<8x1xi1> to vector<8x1xi1>
    %216 = vector.broadcast %215 : vector<8x1xi1> to vector<8x16xi1>
    %217 = arith.select %216, %207, %159 : vector<8x16xi1>, vector<8x16xf32>
    %218 = vector.extract_strided_slice %190 {offsets = [0, 64], sizes = [8, 64], strides = [1, 1]} : vector<8x128xf32> to vector<8x64xf32>
    %cst_47 = arith.constant dense<0.000000e+00> : vector<8x64xf32>
    %219 = tpu.matmul %183, %11, %cst_47 {dimension_numbers = #tpu.dot_dimension_numbers<[1], [0], [0], [1], [0, 0, 1, 1], [], []>} : vector<8x16xf32>, vector<16x64xf32>, vector<8x64xf32> -> vector<8x64xf32>
    %220 = arith.addf %218, %219 : vector<8x64xf32>
    %221 = vector.extract_strided_slice %220 {offsets = [0, 0], sizes = [8, 48], strides = [1, 1]} : vector<8x64xf32> to vector<8x48xf32>
    %222 = arith.negf %221 : vector<8x48xf32>
    %223 = math.exp %222 : vector<8x48xf32>
    %cst_48 = arith.constant 1.000000e+00 : f32
    %224 = vector.broadcast %cst_48 : f32 to vector<8x48xf32>
    %225 = arith.addf %224, %223 : vector<8x48xf32>
    %226 = arith.divf %224, %225 : vector<8x48xf32>
    %227 = vector.extract_strided_slice %220 {offsets = [0, 48], sizes = [8, 16], strides = [1, 1]} : vector<8x64xf32> to vector<8x16xf32>
    %228 = math.tanh %227 : vector<8x16xf32>
    %229 = vector.extract_strided_slice %226 {offsets = [0, 0], sizes = [8, 16], strides = [1, 1]} : vector<8x48xf32> to vector<8x16xf32>
    %230 = vector.extract_strided_slice %226 {offsets = [0, 16], sizes = [8, 16], strides = [1, 1]} : vector<8x48xf32> to vector<8x16xf32>
    %231 = vector.extract_strided_slice %226 {offsets = [0, 32], sizes = [8, 16], strides = [1, 1]} : vector<8x48xf32> to vector<8x16xf32>
    %232 = arith.mulf %230, %186 : vector<8x16xf32>
    %233 = arith.mulf %229, %228 : vector<8x16xf32>
    %234 = arith.addf %232, %233 : vector<8x16xf32>
    %235 = math.tanh %234 : vector<8x16xf32>
    %236 = arith.mulf %231, %235 : vector<8x16xf32>
    %c4_i32 = arith.constant 4 : i32
    %237 = vector.broadcast %c4_i32 : i32 to vector<8x1xi32>
    %238 = arith.cmpi sgt, %0, %237 : vector<8x1xi32>
    %239 = vector.shape_cast %238 : vector<8x1xi1> to vector<8x1xi1>
    %240 = vector.broadcast %239 : vector<8x1xi1> to vector<8x16xi1>
    %241 = arith.select %240, %236, %183 : vector<8x16xi1>, vector<8x16xf32>
    %242 = vector.shape_cast %238 : vector<8x1xi1> to vector<8x1xi1>
    %243 = vector.broadcast %242 : vector<8x1xi1> to vector<8x16xi1>
    %244 = arith.select %243, %234, %186 : vector<8x16xi1>, vector<8x16xf32>
    %c4_49 = arith.constant 4 : index
    %c0_50 = arith.constant 0 : index
    %c0_51 = arith.constant 0 : index
    %245 = vector.load %arg10[%c4_49, %c0_50, %c0_51] : memref<8x8x128xf32, #tpu.memory_space<vmem>>, vector<1x8x128xf32>
    %246 = vector.shape_cast %245 : vector<1x8x128xf32> to vector<8x128xf32>
    %c3_52 = arith.constant 3 : index
    %c0_53 = arith.constant 0 : index
    %c0_54 = arith.constant 0 : index
    %247 = vector.load %arg10[%c3_52, %c0_53, %c0_54] : memref<8x8x128xf32, #tpu.memory_space<vmem>>, vector<1x8x128xf32>
    %248 = vector.shape_cast %247 : vector<1x8x128xf32> to vector<8x128xf32>
    %249 = vector.extract_strided_slice %246 {offsets = [0, 0], sizes = [8, 64], strides = [1, 1]} : vector<8x128xf32> to vector<8x64xf32>
    %cst_55 = arith.constant dense<0.000000e+00> : vector<8x64xf32>
    %250 = tpu.matmul %214, %10, %cst_55 {dimension_numbers = #tpu.dot_dimension_numbers<[1], [0], [0], [1], [0, 0, 1, 1], [], []>} : vector<8x16xf32>, vector<16x64xf32>, vector<8x64xf32> -> vector<8x64xf32>
    %251 = arith.addf %249, %250 : vector<8x64xf32>
    %252 = vector.extract_strided_slice %251 {offsets = [0, 0], sizes = [8, 48], strides = [1, 1]} : vector<8x64xf32> to vector<8x48xf32>
    %253 = arith.negf %252 : vector<8x48xf32>
    %254 = math.exp %253 : vector<8x48xf32>
    %cst_56 = arith.constant 1.000000e+00 : f32
    %255 = vector.broadcast %cst_56 : f32 to vector<8x48xf32>
    %256 = arith.addf %255, %254 : vector<8x48xf32>
    %257 = arith.divf %255, %256 : vector<8x48xf32>
    %258 = vector.extract_strided_slice %251 {offsets = [0, 48], sizes = [8, 16], strides = [1, 1]} : vector<8x64xf32> to vector<8x16xf32>
    %259 = math.tanh %258 : vector<8x16xf32>
    %260 = vector.extract_strided_slice %257 {offsets = [0, 0], sizes = [8, 16], strides = [1, 1]} : vector<8x48xf32> to vector<8x16xf32>
    %261 = vector.extract_strided_slice %257 {offsets = [0, 16], sizes = [8, 16], strides = [1, 1]} : vector<8x48xf32> to vector<8x16xf32>
    %262 = vector.extract_strided_slice %257 {offsets = [0, 32], sizes = [8, 16], strides = [1, 1]} : vector<8x48xf32> to vector<8x16xf32>
    %263 = arith.mulf %261, %217 : vector<8x16xf32>
    %264 = arith.mulf %260, %259 : vector<8x16xf32>
    %265 = arith.addf %263, %264 : vector<8x16xf32>
    %266 = math.tanh %265 : vector<8x16xf32>
    %267 = arith.mulf %262, %266 : vector<8x16xf32>
    %c4_i32_57 = arith.constant 4 : i32
    %268 = vector.broadcast %c4_i32_57 : i32 to vector<8x1xi32>
    %269 = arith.cmpi sgt, %0, %268 : vector<8x1xi32>
    %270 = vector.shape_cast %269 : vector<8x1xi1> to vector<8x1xi1>
    %271 = vector.broadcast %270 : vector<8x1xi1> to vector<8x16xi1>
    %272 = arith.select %271, %267, %214 : vector<8x16xi1>, vector<8x16xf32>
    %273 = vector.shape_cast %269 : vector<8x1xi1> to vector<8x1xi1>
    %274 = vector.broadcast %273 : vector<8x1xi1> to vector<8x16xi1>
    %275 = arith.select %274, %265, %217 : vector<8x16xi1>, vector<8x16xf32>
    %276 = vector.extract_strided_slice %248 {offsets = [0, 64], sizes = [8, 64], strides = [1, 1]} : vector<8x128xf32> to vector<8x64xf32>
    %cst_58 = arith.constant dense<0.000000e+00> : vector<8x64xf32>
    %277 = tpu.matmul %241, %11, %cst_58 {dimension_numbers = #tpu.dot_dimension_numbers<[1], [0], [0], [1], [0, 0, 1, 1], [], []>} : vector<8x16xf32>, vector<16x64xf32>, vector<8x64xf32> -> vector<8x64xf32>
    %278 = arith.addf %276, %277 : vector<8x64xf32>
    %279 = vector.extract_strided_slice %278 {offsets = [0, 0], sizes = [8, 48], strides = [1, 1]} : vector<8x64xf32> to vector<8x48xf32>
    %280 = arith.negf %279 : vector<8x48xf32>
    %281 = math.exp %280 : vector<8x48xf32>
    %cst_59 = arith.constant 1.000000e+00 : f32
    %282 = vector.broadcast %cst_59 : f32 to vector<8x48xf32>
    %283 = arith.addf %282, %281 : vector<8x48xf32>
    %284 = arith.divf %282, %283 : vector<8x48xf32>
    %285 = vector.extract_strided_slice %278 {offsets = [0, 48], sizes = [8, 16], strides = [1, 1]} : vector<8x64xf32> to vector<8x16xf32>
    %286 = math.tanh %285 : vector<8x16xf32>
    %287 = vector.extract_strided_slice %284 {offsets = [0, 0], sizes = [8, 16], strides = [1, 1]} : vector<8x48xf32> to vector<8x16xf32>
    %288 = vector.extract_strided_slice %284 {offsets = [0, 16], sizes = [8, 16], strides = [1, 1]} : vector<8x48xf32> to vector<8x16xf32>
    %289 = vector.extract_strided_slice %284 {offsets = [0, 32], sizes = [8, 16], strides = [1, 1]} : vector<8x48xf32> to vector<8x16xf32>
    %290 = arith.mulf %288, %244 : vector<8x16xf32>
    %291 = arith.mulf %287, %286 : vector<8x16xf32>
    %292 = arith.addf %290, %291 : vector<8x16xf32>
    %293 = math.tanh %292 : vector<8x16xf32>
    %294 = arith.mulf %289, %293 : vector<8x16xf32>
    %c3_i32_60 = arith.constant 3 : i32
    %295 = vector.broadcast %c3_i32_60 : i32 to vector<8x1xi32>
    %296 = arith.cmpi sgt, %0, %295 : vector<8x1xi32>
    %297 = vector.shape_cast %296 : vector<8x1xi1> to vector<8x1xi1>
    %298 = vector.broadcast %297 : vector<8x1xi1> to vector<8x16xi1>
    %299 = arith.select %298, %294, %241 : vector<8x16xi1>, vector<8x16xf32>
    %300 = vector.shape_cast %296 : vector<8x1xi1> to vector<8x1xi1>
    %301 = vector.broadcast %300 : vector<8x1xi1> to vector<8x16xi1>
    %302 = arith.select %301, %292, %244 : vector<8x16xi1>, vector<8x16xf32>
    %c5_61 = arith.constant 5 : index
    %c0_62 = arith.constant 0 : index
    %c0_63 = arith.constant 0 : index
    %303 = vector.load %arg10[%c5_61, %c0_62, %c0_63] : memref<8x8x128xf32, #tpu.memory_space<vmem>>, vector<1x8x128xf32>
    %304 = vector.shape_cast %303 : vector<1x8x128xf32> to vector<8x128xf32>
    %c2_64 = arith.constant 2 : index
    %c0_65 = arith.constant 0 : index
    %c0_66 = arith.constant 0 : index
    %305 = vector.load %arg10[%c2_64, %c0_65, %c0_66] : memref<8x8x128xf32, #tpu.memory_space<vmem>>, vector<1x8x128xf32>
    %306 = vector.shape_cast %305 : vector<1x8x128xf32> to vector<8x128xf32>
    %307 = vector.extract_strided_slice %304 {offsets = [0, 0], sizes = [8, 64], strides = [1, 1]} : vector<8x128xf32> to vector<8x64xf32>
    %cst_67 = arith.constant dense<0.000000e+00> : vector<8x64xf32>
    %308 = tpu.matmul %272, %10, %cst_67 {dimension_numbers = #tpu.dot_dimension_numbers<[1], [0], [0], [1], [0, 0, 1, 1], [], []>} : vector<8x16xf32>, vector<16x64xf32>, vector<8x64xf32> -> vector<8x64xf32>
    %309 = arith.addf %307, %308 : vector<8x64xf32>
    %310 = vector.extract_strided_slice %309 {offsets = [0, 0], sizes = [8, 48], strides = [1, 1]} : vector<8x64xf32> to vector<8x48xf32>
    %311 = arith.negf %310 : vector<8x48xf32>
    %312 = math.exp %311 : vector<8x48xf32>
    %cst_68 = arith.constant 1.000000e+00 : f32
    %313 = vector.broadcast %cst_68 : f32 to vector<8x48xf32>
    %314 = arith.addf %313, %312 : vector<8x48xf32>
    %315 = arith.divf %313, %314 : vector<8x48xf32>
    %316 = vector.extract_strided_slice %309 {offsets = [0, 48], sizes = [8, 16], strides = [1, 1]} : vector<8x64xf32> to vector<8x16xf32>
    %317 = math.tanh %316 : vector<8x16xf32>
    %318 = vector.extract_strided_slice %315 {offsets = [0, 0], sizes = [8, 16], strides = [1, 1]} : vector<8x48xf32> to vector<8x16xf32>
    %319 = vector.extract_strided_slice %315 {offsets = [0, 16], sizes = [8, 16], strides = [1, 1]} : vector<8x48xf32> to vector<8x16xf32>
    %320 = vector.extract_strided_slice %315 {offsets = [0, 32], sizes = [8, 16], strides = [1, 1]} : vector<8x48xf32> to vector<8x16xf32>
    %321 = arith.mulf %319, %275 : vector<8x16xf32>
    %322 = arith.mulf %318, %317 : vector<8x16xf32>
    %323 = arith.addf %321, %322 : vector<8x16xf32>
    %324 = math.tanh %323 : vector<8x16xf32>
    %325 = arith.mulf %320, %324 : vector<8x16xf32>
    %c5_i32_69 = arith.constant 5 : i32
    %326 = vector.broadcast %c5_i32_69 : i32 to vector<8x1xi32>
    %327 = arith.cmpi sgt, %0, %326 : vector<8x1xi32>
    %328 = vector.shape_cast %327 : vector<8x1xi1> to vector<8x1xi1>
    %329 = vector.broadcast %328 : vector<8x1xi1> to vector<8x16xi1>
    %330 = arith.select %329, %325, %272 : vector<8x16xi1>, vector<8x16xf32>
    %331 = vector.shape_cast %327 : vector<8x1xi1> to vector<8x1xi1>
    %332 = vector.broadcast %331 : vector<8x1xi1> to vector<8x16xi1>
    %333 = arith.select %332, %323, %275 : vector<8x16xi1>, vector<8x16xf32>
    %334 = vector.extract_strided_slice %306 {offsets = [0, 64], sizes = [8, 64], strides = [1, 1]} : vector<8x128xf32> to vector<8x64xf32>
    %cst_70 = arith.constant dense<0.000000e+00> : vector<8x64xf32>
    %335 = tpu.matmul %299, %11, %cst_70 {dimension_numbers = #tpu.dot_dimension_numbers<[1], [0], [0], [1], [0, 0, 1, 1], [], []>} : vector<8x16xf32>, vector<16x64xf32>, vector<8x64xf32> -> vector<8x64xf32>
    %336 = arith.addf %334, %335 : vector<8x64xf32>
    %337 = vector.extract_strided_slice %336 {offsets = [0, 0], sizes = [8, 48], strides = [1, 1]} : vector<8x64xf32> to vector<8x48xf32>
    %338 = arith.negf %337 : vector<8x48xf32>
    %339 = math.exp %338 : vector<8x48xf32>
    %cst_71 = arith.constant 1.000000e+00 : f32
    %340 = vector.broadcast %cst_71 : f32 to vector<8x48xf32>
    %341 = arith.addf %340, %339 : vector<8x48xf32>
    %342 = arith.divf %340, %341 : vector<8x48xf32>
    %343 = vector.extract_strided_slice %336 {offsets = [0, 48], sizes = [8, 16], strides = [1, 1]} : vector<8x64xf32> to vector<8x16xf32>
    %344 = math.tanh %343 : vector<8x16xf32>
    %345 = vector.extract_strided_slice %342 {offsets = [0, 0], sizes = [8, 16], strides = [1, 1]} : vector<8x48xf32> to vector<8x16xf32>
    %346 = vector.extract_strided_slice %342 {offsets = [0, 16], sizes = [8, 16], strides = [1, 1]} : vector<8x48xf32> to vector<8x16xf32>
    %347 = vector.extract_strided_slice %342 {offsets = [0, 32], sizes = [8, 16], strides = [1, 1]} : vector<8x48xf32> to vector<8x16xf32>
    %348 = arith.mulf %346, %302 : vector<8x16xf32>
    %349 = arith.mulf %345, %344 : vector<8x16xf32>
    %350 = arith.addf %348, %349 : vector<8x16xf32>
    %351 = math.tanh %350 : vector<8x16xf32>
    %352 = arith.mulf %347, %351 : vector<8x16xf32>
    %c2_i32_72 = arith.constant 2 : i32
    %353 = vector.broadcast %c2_i32_72 : i32 to vector<8x1xi32>
    %354 = arith.cmpi sgt, %0, %353 : vector<8x1xi32>
    %355 = vector.shape_cast %354 : vector<8x1xi1> to vector<8x1xi1>
    %356 = vector.broadcast %355 : vector<8x1xi1> to vector<8x16xi1>
    %357 = arith.select %356, %352, %299 : vector<8x16xi1>, vector<8x16xf32>
    %358 = vector.shape_cast %354 : vector<8x1xi1> to vector<8x1xi1>
    %359 = vector.broadcast %358 : vector<8x1xi1> to vector<8x16xi1>
    %360 = arith.select %359, %350, %302 : vector<8x16xi1>, vector<8x16xf32>
    %c6_73 = arith.constant 6 : index
    %c0_74 = arith.constant 0 : index
    %c0_75 = arith.constant 0 : index
    %361 = vector.load %arg10[%c6_73, %c0_74, %c0_75] : memref<8x8x128xf32, #tpu.memory_space<vmem>>, vector<1x8x128xf32>
    %362 = vector.shape_cast %361 : vector<1x8x128xf32> to vector<8x128xf32>
    %c1_76 = arith.constant 1 : index
    %c0_77 = arith.constant 0 : index
    %c0_78 = arith.constant 0 : index
    %363 = vector.load %arg10[%c1_76, %c0_77, %c0_78] : memref<8x8x128xf32, #tpu.memory_space<vmem>>, vector<1x8x128xf32>
    %364 = vector.shape_cast %363 : vector<1x8x128xf32> to vector<8x128xf32>
    %365 = vector.extract_strided_slice %362 {offsets = [0, 0], sizes = [8, 64], strides = [1, 1]} : vector<8x128xf32> to vector<8x64xf32>
    %cst_79 = arith.constant dense<0.000000e+00> : vector<8x64xf32>
    %366 = tpu.matmul %330, %10, %cst_79 {dimension_numbers = #tpu.dot_dimension_numbers<[1], [0], [0], [1], [0, 0, 1, 1], [], []>} : vector<8x16xf32>, vector<16x64xf32>, vector<8x64xf32> -> vector<8x64xf32>
    %367 = arith.addf %365, %366 : vector<8x64xf32>
    %368 = vector.extract_strided_slice %367 {offsets = [0, 0], sizes = [8, 48], strides = [1, 1]} : vector<8x64xf32> to vector<8x48xf32>
    %369 = arith.negf %368 : vector<8x48xf32>
    %370 = math.exp %369 : vector<8x48xf32>
    %cst_80 = arith.constant 1.000000e+00 : f32
    %371 = vector.broadcast %cst_80 : f32 to vector<8x48xf32>
    %372 = arith.addf %371, %370 : vector<8x48xf32>
    %373 = arith.divf %371, %372 : vector<8x48xf32>
    %374 = vector.extract_strided_slice %367 {offsets = [0, 48], sizes = [8, 16], strides = [1, 1]} : vector<8x64xf32> to vector<8x16xf32>
    %375 = math.tanh %374 : vector<8x16xf32>
    %376 = vector.extract_strided_slice %373 {offsets = [0, 0], sizes = [8, 16], strides = [1, 1]} : vector<8x48xf32> to vector<8x16xf32>
    %377 = vector.extract_strided_slice %373 {offsets = [0, 16], sizes = [8, 16], strides = [1, 1]} : vector<8x48xf32> to vector<8x16xf32>
    %378 = vector.extract_strided_slice %373 {offsets = [0, 32], sizes = [8, 16], strides = [1, 1]} : vector<8x48xf32> to vector<8x16xf32>
    %379 = arith.mulf %377, %333 : vector<8x16xf32>
    %380 = arith.mulf %376, %375 : vector<8x16xf32>
    %381 = arith.addf %379, %380 : vector<8x16xf32>
    %382 = math.tanh %381 : vector<8x16xf32>
    %383 = arith.mulf %378, %382 : vector<8x16xf32>
    %c6_i32_81 = arith.constant 6 : i32
    %384 = vector.broadcast %c6_i32_81 : i32 to vector<8x1xi32>
    %385 = arith.cmpi sgt, %0, %384 : vector<8x1xi32>
    %386 = vector.shape_cast %385 : vector<8x1xi1> to vector<8x1xi1>
    %387 = vector.broadcast %386 : vector<8x1xi1> to vector<8x16xi1>
    %388 = arith.select %387, %383, %330 : vector<8x16xi1>, vector<8x16xf32>
    %389 = vector.shape_cast %385 : vector<8x1xi1> to vector<8x1xi1>
    %390 = vector.broadcast %389 : vector<8x1xi1> to vector<8x16xi1>
    %391 = arith.select %390, %381, %333 : vector<8x16xi1>, vector<8x16xf32>
    %392 = vector.extract_strided_slice %364 {offsets = [0, 64], sizes = [8, 64], strides = [1, 1]} : vector<8x128xf32> to vector<8x64xf32>
    %cst_82 = arith.constant dense<0.000000e+00> : vector<8x64xf32>
    %393 = tpu.matmul %357, %11, %cst_82 {dimension_numbers = #tpu.dot_dimension_numbers<[1], [0], [0], [1], [0, 0, 1, 1], [], []>} : vector<8x16xf32>, vector<16x64xf32>, vector<8x64xf32> -> vector<8x64xf32>
    %394 = arith.addf %392, %393 : vector<8x64xf32>
    %395 = vector.extract_strided_slice %394 {offsets = [0, 0], sizes = [8, 48], strides = [1, 1]} : vector<8x64xf32> to vector<8x48xf32>
    %396 = arith.negf %395 : vector<8x48xf32>
    %397 = math.exp %396 : vector<8x48xf32>
    %cst_83 = arith.constant 1.000000e+00 : f32
    %398 = vector.broadcast %cst_83 : f32 to vector<8x48xf32>
    %399 = arith.addf %398, %397 : vector<8x48xf32>
    %400 = arith.divf %398, %399 : vector<8x48xf32>
    %401 = vector.extract_strided_slice %394 {offsets = [0, 48], sizes = [8, 16], strides = [1, 1]} : vector<8x64xf32> to vector<8x16xf32>
    %402 = math.tanh %401 : vector<8x16xf32>
    %403 = vector.extract_strided_slice %400 {offsets = [0, 0], sizes = [8, 16], strides = [1, 1]} : vector<8x48xf32> to vector<8x16xf32>
    %404 = vector.extract_strided_slice %400 {offsets = [0, 16], sizes = [8, 16], strides = [1, 1]} : vector<8x48xf32> to vector<8x16xf32>
    %405 = vector.extract_strided_slice %400 {offsets = [0, 32], sizes = [8, 16], strides = [1, 1]} : vector<8x48xf32> to vector<8x16xf32>
    %406 = arith.mulf %404, %360 : vector<8x16xf32>
    %407 = arith.mulf %403, %402 : vector<8x16xf32>
    %408 = arith.addf %406, %407 : vector<8x16xf32>
    %409 = math.tanh %408 : vector<8x16xf32>
    %410 = arith.mulf %405, %409 : vector<8x16xf32>
    %c1_i32_84 = arith.constant 1 : i32
    %411 = vector.broadcast %c1_i32_84 : i32 to vector<8x1xi32>
    %412 = arith.cmpi sgt, %0, %411 : vector<8x1xi32>
    %413 = vector.shape_cast %412 : vector<8x1xi1> to vector<8x1xi1>
    %414 = vector.broadcast %413 : vector<8x1xi1> to vector<8x16xi1>
    %415 = arith.select %414, %410, %357 : vector<8x16xi1>, vector<8x16xf32>
    %416 = vector.shape_cast %412 : vector<8x1xi1> to vector<8x1xi1>
    %417 = vector.broadcast %416 : vector<8x1xi1> to vector<8x16xi1>
    %418 = arith.select %417, %408, %360 : vector<8x16xi1>, vector<8x16xf32>
    %c7_85 = arith.constant 7 : index
    %c0_86 = arith.constant 0 : index
    %c0_87 = arith.constant 0 : index
    %419 = vector.load %arg10[%c7_85, %c0_86, %c0_87] : memref<8x8x128xf32, #tpu.memory_space<vmem>>, vector<1x8x128xf32>
    %420 = vector.shape_cast %419 : vector<1x8x128xf32> to vector<8x128xf32>
    %c0_88 = arith.constant 0 : index
    %c0_89 = arith.constant 0 : index
    %c0_90 = arith.constant 0 : index
    %421 = vector.load %arg10[%c0_88, %c0_89, %c0_90] : memref<8x8x128xf32, #tpu.memory_space<vmem>>, vector<1x8x128xf32>
    %422 = vector.shape_cast %421 : vector<1x8x128xf32> to vector<8x128xf32>
    %423 = vector.extract_strided_slice %420 {offsets = [0, 0], sizes = [8, 64], strides = [1, 1]} : vector<8x128xf32> to vector<8x64xf32>
    %cst_91 = arith.constant dense<0.000000e+00> : vector<8x64xf32>
    %424 = tpu.matmul %388, %10, %cst_91 {dimension_numbers = #tpu.dot_dimension_numbers<[1], [0], [0], [1], [0, 0, 1, 1], [], []>} : vector<8x16xf32>, vector<16x64xf32>, vector<8x64xf32> -> vector<8x64xf32>
    %425 = arith.addf %423, %424 : vector<8x64xf32>
    %426 = vector.extract_strided_slice %425 {offsets = [0, 0], sizes = [8, 48], strides = [1, 1]} : vector<8x64xf32> to vector<8x48xf32>
    %427 = arith.negf %426 : vector<8x48xf32>
    %428 = math.exp %427 : vector<8x48xf32>
    %cst_92 = arith.constant 1.000000e+00 : f32
    %429 = vector.broadcast %cst_92 : f32 to vector<8x48xf32>
    %430 = arith.addf %429, %428 : vector<8x48xf32>
    %431 = arith.divf %429, %430 : vector<8x48xf32>
    %432 = vector.extract_strided_slice %425 {offsets = [0, 48], sizes = [8, 16], strides = [1, 1]} : vector<8x64xf32> to vector<8x16xf32>
    %433 = math.tanh %432 : vector<8x16xf32>
    %434 = vector.extract_strided_slice %431 {offsets = [0, 0], sizes = [8, 16], strides = [1, 1]} : vector<8x48xf32> to vector<8x16xf32>
    %435 = vector.extract_strided_slice %431 {offsets = [0, 16], sizes = [8, 16], strides = [1, 1]} : vector<8x48xf32> to vector<8x16xf32>
    %436 = vector.extract_strided_slice %431 {offsets = [0, 32], sizes = [8, 16], strides = [1, 1]} : vector<8x48xf32> to vector<8x16xf32>
    %437 = arith.mulf %435, %391 : vector<8x16xf32>
    %438 = arith.mulf %434, %433 : vector<8x16xf32>
    %439 = arith.addf %437, %438 : vector<8x16xf32>
    %440 = math.tanh %439 : vector<8x16xf32>
    %441 = arith.mulf %436, %440 : vector<8x16xf32>
    %c7_i32_93 = arith.constant 7 : i32
    %442 = vector.broadcast %c7_i32_93 : i32 to vector<8x1xi32>
    %443 = arith.cmpi sgt, %0, %442 : vector<8x1xi32>
    %444 = vector.shape_cast %443 : vector<8x1xi1> to vector<8x1xi1>
    %445 = vector.broadcast %444 : vector<8x1xi1> to vector<8x16xi1>
    %446 = arith.select %445, %441, %388 : vector<8x16xi1>, vector<8x16xf32>
    %447 = vector.extract_strided_slice %422 {offsets = [0, 64], sizes = [8, 64], strides = [1, 1]} : vector<8x128xf32> to vector<8x64xf32>
    %cst_94 = arith.constant dense<0.000000e+00> : vector<8x64xf32>
    %448 = tpu.matmul %415, %11, %cst_94 {dimension_numbers = #tpu.dot_dimension_numbers<[1], [0], [0], [1], [0, 0, 1, 1], [], []>} : vector<8x16xf32>, vector<16x64xf32>, vector<8x64xf32> -> vector<8x64xf32>
    %449 = arith.addf %447, %448 : vector<8x64xf32>
    %450 = vector.extract_strided_slice %449 {offsets = [0, 0], sizes = [8, 48], strides = [1, 1]} : vector<8x64xf32> to vector<8x48xf32>
    %451 = arith.negf %450 : vector<8x48xf32>
    %452 = math.exp %451 : vector<8x48xf32>
    %cst_95 = arith.constant 1.000000e+00 : f32
    %453 = vector.broadcast %cst_95 : f32 to vector<8x48xf32>
    %454 = arith.addf %453, %452 : vector<8x48xf32>
    %455 = arith.divf %453, %454 : vector<8x48xf32>
    %456 = vector.extract_strided_slice %449 {offsets = [0, 48], sizes = [8, 16], strides = [1, 1]} : vector<8x64xf32> to vector<8x16xf32>
    %457 = math.tanh %456 : vector<8x16xf32>
    %458 = vector.extract_strided_slice %455 {offsets = [0, 0], sizes = [8, 16], strides = [1, 1]} : vector<8x48xf32> to vector<8x16xf32>
    %459 = vector.extract_strided_slice %455 {offsets = [0, 16], sizes = [8, 16], strides = [1, 1]} : vector<8x48xf32> to vector<8x16xf32>
    %460 = vector.extract_strided_slice %455 {offsets = [0, 32], sizes = [8, 16], strides = [1, 1]} : vector<8x48xf32> to vector<8x16xf32>
    %461 = arith.mulf %459, %418 : vector<8x16xf32>
    %462 = arith.mulf %458, %457 : vector<8x16xf32>
    %463 = arith.addf %461, %462 : vector<8x16xf32>
    %464 = math.tanh %463 : vector<8x16xf32>
    %465 = arith.mulf %460, %464 : vector<8x16xf32>
    %c0_i32_96 = arith.constant 0 : i32
    %466 = vector.broadcast %c0_i32_96 : i32 to vector<8x1xi32>
    %467 = arith.cmpi sgt, %0, %466 : vector<8x1xi32>
    %468 = vector.shape_cast %467 : vector<8x1xi1> to vector<8x1xi1>
    %469 = vector.broadcast %468 : vector<8x1xi1> to vector<8x16xi1>
    %470 = arith.select %469, %465, %415 : vector<8x16xi1>, vector<8x16xf32>
    %471 = tpu.concatenate %446, %470 in 1 : vector<8x16xf32>, vector<8x16xf32> -> vector<8x32xf32>
    %c0_97 = arith.constant 0 : index
    %c0_98 = arith.constant 0 : index
    %472 = vector.load %arg7[%c0_97, %c0_98] : memref<32x128xf32, #tpu.memory_space<vmem>>, vector<32x128xf32>
    %cst_99 = arith.constant dense<0.000000e+00> : vector<8x128xf32>
    %473 = tpu.matmul %471, %472, %cst_99 {dimension_numbers = #tpu.dot_dimension_numbers<[1], [0], [0], [1], [0, 0, 1, 1], [], []>} : vector<8x32xf32>, vector<32x128xf32>, vector<8x128xf32> -> vector<8x128xf32>
    %c0_100 = arith.constant 0 : index
    %c0_101 = arith.constant 0 : index
    %474 = vector.load %arg8[%c0_100, %c0_101] : memref<1x128xf32, #tpu.memory_space<vmem>>, vector<1x128xf32>
    %475 = vector.broadcast %474 : vector<1x128xf32> to vector<8x128xf32>
    %476 = arith.addf %473, %475 : vector<8x128xf32>
    %c0_102 = arith.constant 0 : index
    %c0_103 = arith.constant 0 : index
    %477 = vector.load %arg9[%c0_102, %c0_103] : memref<8x128xf32, #tpu.memory_space<vmem>>, vector<8x128xf32>
    tpu.vector_store %arg9[%c0_102, %c0_103], %476 {strides = array<i32>} : memref<8x128xf32, #tpu.memory_space<vmem>>, vector<8x128xf32>,
    return
  }
  func.func @transform_0(%arg0: i32) -> (i32, i32) {
    %c0_i32 = arith.constant 0 : i32
    %c0_i32_0 = arith.constant 0 : i32
    return %arg0, %c0_i32 : i32, i32
  }
  func.func @transform_1(%arg0: i32) -> (i32, i32, i32) {
    %c0_i32 = arith.constant 0 : i32
    %c0_i32_0 = arith.constant 0 : i32
    %c0_i32_1 = arith.constant 0 : i32
    return %c0_i32, %arg0, %c0_i32_0 : i32, i32, i32
  }
  func.func @transform_2(%arg0: i32) -> (i32, i32) {
    %c0_i32 = arith.constant 0 : i32
    %c0_i32_0 = arith.constant 0 : i32
    %c0_i32_1 = arith.constant 0 : i32
    return %c0_i32, %c0_i32_0 : i32, i32
  }
  func.func @transform_3(%arg0: i32) -> (i32, i32) {
    %c0_i32 = arith.constant 0 : i32
    %c0_i32_0 = arith.constant 0 : i32
    %c0_i32_1 = arith.constant 0 : i32
    return %c0_i32, %c0_i32_0 : i32, i32
  }
  func.func @transform_4(%arg0: i32) -> (i32, i32) {
    %c0_i32 = arith.constant 0 : i32
    %c0_i32_0 = arith.constant 0 : i32
    %c0_i32_1 = arith.constant 0 : i32
    return %c0_i32, %c0_i32_0 : i32, i32
  }
  func.func @transform_5(%arg0: i32) -> (i32, i32) {
    %c0_i32 = arith.constant 0 : i32
    %c0_i32_0 = arith.constant 0 : i32
    %c0_i32_1 = arith.constant 0 : i32
    return %c0_i32, %c0_i32_0 : i32, i32
  }
  func.func @transform_6(%arg0: i32) -> (i32, i32) {
    %c0_i32 = arith.constant 0 : i32
    %c0_i32_0 = arith.constant 0 : i32
    %c0_i32_1 = arith.constant 0 : i32
    return %c0_i32, %c0_i32_0 : i32, i32
  }
  func.func @transform_7(%arg0: i32) -> (i32, i32) {
    %c0_i32 = arith.constant 0 : i32
    %c0_i32_0 = arith.constant 0 : i32
    %c0_i32_1 = arith.constant 0 : i32
    return %c0_i32, %c0_i32_0 : i32, i32
  }
  func.func @transform_8(%arg0: i32) -> (i32, i32) {
    %c0_i32 = arith.constant 0 : i32
    %c0_i32_0 = arith.constant 0 : i32
    return %arg0, %c0_i32 : i32, i32
  }
}

</mosaic_0001>

<bundles_post_ra>
// kernel: bilstm_forward.1
= control target key start
LH: loop header
LB: loop body
LE: loop exit
PB: predicated region body
PF: predicated region fallthrough
CT: control target
= control target key end

     0   :  { %v2459_v0 = vmov 0.0|0.0   ;;  %vm2460_vm0 = vmmov 0   ;;  %v2461_v4 = vmov 0.0   ;;  %vm49_vm1 = vcmask 261120   ;;  %s2462_s14 = smov 64   ;;  %s2465_s16 = smov 16   ;;  %s2999_s2 = inlined_call_operand.vmem [shape: f32[32,128], index: 2, kind: input, shape index: {}]   ;;  %s3000_s4 = inlined_call_operand.vmem [shape: f32[16,64], index: 4, kind: input, shape index: {}]   ;;  %s3001_s5 = inlined_call_operand.vmem [shape: f32[16,64], index: 5, kind: input, shape index: {}]   ;;  %s3002_s1 = inlined_call_operand.vmem [shape: f32[8,8,32], index: 1, kind: input, shape index: {}]   ;;  %s3003_s3 = inlined_call_operand.vmem [shape: f32[1,128], index: 3, kind: input, shape index: {}]   ;;  %s3004_s0 = inlined_call_operand.vmem [shape: s32[8,1], index: 0, kind: input, shape index: {}]   ;;  %s3005_s6 = inlined_call_operand.vmem [shape: f32[32,128], index: 6, kind: input, shape index: {}]   ;;  %s3006_s7 = inlined_call_operand.vmem [shape: f32[1,128], index: 7, kind: input, shape index: {}]   ;;  %s3007_s8 = inlined_call_operand.vmem [shape: f32[8,128], index: 8, kind: output, shape index: {}]  }
   0x1   :  { %2265 = vmatprep.subr.bf16.mxu1 %v2459_v0  ;;  %v38_v1 = vld [vmem:[%s2999_s2] sm:$0xff]  ;;  %v39_v2 = vld [vmem:[%s2999_s2 + $0x8] sm:$0xff]  ;;  %2138 = vmatprep.mubr.msk.f32.mxu1 %vm2460_vm0, %v2461_v4  ;;  %v40_v7 = vld [vmem:[%s2999_s2 + $0x10] sm:$0xff]  ;;  %v2463_v36 = vmov 0   ;;  %s2467_s17 = smov 32   ;;  %vm194_vm6 = vcmask 130048  }
   0x2   :  { %v187_v3 = vld [vmem:[%s3000_s4] sm:$0xff]  ;;  %v2257_v5 = vpack.c.bf16 %v39_v2, %v38_v1  ;;  %v188_v6 = vld [vmem:[%s3000_s4 + $0x8] sm:$0xff]  ;;  %v41_v8 = vld [vmem:[%s2999_s2 + $0x18] sm:$0xff]  ;;  %2329 = vset.pattern.permute.xlu1 %v2463_v36  ;;  %2330 = vset.pattern.permute.xlu0 %v2463_v36  ;;  %s2468_s23 = smov 48  }
   0x3   :  { %v2535_v9 = vpack.c.bf16 %v188_v6, %v187_v3  ;;  %v2261_v10 = vpack.c.bf16 %v41_v8, %v40_v7  ;;  %v189_v11 = vld [vmem:[%s3001_s5] sm:$0xff]  ;;  %v190_v12 = vld [vmem:[%s3001_s5 + $0x8] sm:$0xff]  ;;  %v32_v16 = vld [vmem:[%s3002_s1 + $0x10] sm:$0xff] }
   0x4   :  { %v30_v13 = vld [vmem:[%s3002_s1] sm:$0xff]  ;;  %2258 = vmatprep.subr.bf16.mxu0 %v2257_v5  ;;  %v2548_v14 = vpack.c.bf16 %v190_v12, %v189_v11  ;;  %v31_v15 = vld [vmem:[%s3002_s1 + $0x8] sm:$0xff]  ;;  %v33_v17 = vld [vmem:[%s3002_s1 + $0x18] sm:$0xff] }
   0x5   :  { %2122 = vmatprep.mubr.msk.f32.mxu0 %vm49_vm1, %v30_v13  ;;  %2267 = vmatpush3.bf16.msra.mxu1 %v2535_v9  ;;  %v34_v18 = vld [vmem:[%s3002_s1 + $0x20] sm:$0xff]  ;;  %v35_v19 = vld [vmem:[%s3002_s1 + $0x28] sm:$0xff]  ;;  %v36_v20 = vld [vmem:[%s3002_s1 + $0x30] sm:$0xff] }
   0x6   :  { %2260 = vmatpush3.bf16.msra.mxu0 %v2257_v5  ;;  %2268 = vmatprep.subr.bf16.mxu1 %v2459_v0  ;;  %v37_v21 = vld [vmem:[%s3002_s1 + $0x38] sm:$0xff]  ;;  %v2008_v24 = vld [vmem:[%s3003_s3] ss:$0 sm:$0xff]  ;;  %s2464_s1 = smov 80  }
   0x7   :  { %2262 = vmatprep.subr.bf16.mxu0 %v2261_v10  ;;  %v2623_v52 = vld [vmem:[%s3004_s0] sm:$0xff]  ;;  %s2466_s0 = smov 96  }
   0x8   :  { %2139 = vmatmul.mubr.f32.vlgmr.msra.gmra.mrb[0].mxu1 %v2461_v4  ;;  %vm293_vm2 = vcmp.gt.s32.totalorder %v2623_v52, 0  ;;  %vm400_vm3 = vcmp.gt.s32.totalorder %v2623_v52, 7  ;;  %vm624_vm7 = vcmp.gt.s32.totalorder %v2623_v52, 6  ;;  %vm512_vm9 = vcmp.gt.s32.totalorder %v2623_v52, 1 }
   0x9   :  { %2270 = vmatpush3.bf16.msra.mxu1 %v2548_v14  ;;  %2145 = vmatprep.mubr.msk.f32.mxu1 %vm2460_vm0, %v2461_v4  ;;  %v294_v56 = vsel %vm293_vm2, 1, %v2463_v36  ;;  %v401_v1 = vsel %vm400_vm3, 1, %v2463_v36  ;;  %vm848_vm11 = vcmp.gt.s32.totalorder %v2623_v52, 5  ;;  %vm736_vm12 = vcmp.gt.s32.totalorder %v2623_v52, 2 }
   0xa   :  { %2264 = vmatpush3.bf16.msra.mxu0 %v2261_v10  ;;  %2271 = vmatprep.subr.bf16.mxu1 %v2459_v0  ;;  %vm1072_vm15 = vcmp.gt.s32.totalorder %v2623_v52, 4  ;;  %vm960_vm2 = vcmp.gt.s32.totalorder %v2623_v52, 3 }
   0xb   :  { %2280 = vmatprep.subr.bf16.mxu0 %v2459_v0 }
   0xc   :  { %2146 = vmatmul.mubr.f32.vlgmr.msra.gmra.mrb[2].mxu1 %v2461_v4 }
   0xd   :  { %2123 = vmatmul.mubr.msk.f32.vlgmr.msra.gmra.mrb[0].mxu0 %vm49_vm1, %v31_v15  ;;  %2273 = vmatpush3.bf16.msra.mxu1 %v2535_v9 }
   0xe   :  { %2125 = vmatprep.mubr.msk.f32.mxu0 %vm49_vm1, %v32_v16  ;;  %2152 = vmatprep.mubr.msk.f32.mxu1 %vm2460_vm0, %v2461_v4 }
   0xf   :  { %2274 = vmatprep.subr.bf16.mxu1 %v2459_v0  ;;  %2282 = vmatpush3.bf16.msra.mxu0 %v2548_v14 }
  0x10   :  { %2286 = vmatprep.subr.bf16.mxu0 %v2459_v0 }
  0x11   :  { %2126 = vmatmul.mubr.msk.f32.gmra.mrb[2].mxu0 %vm49_vm1, %v33_v17 }
  0x12   :  { %2128 = vmatprep.mubr.msk.f32.mxu0 %vm49_vm1, %v34_v18 }
  0x15   :  { %2129 = vmatmul.mubr.msk.f32.gmra.mrb[4].mxu0 %vm49_vm1, %v35_v19 }
  0x16   :  { %2131 = vmatprep.mubr.msk.f32.mxu0 %vm49_vm1, %v36_v20 }
  0x19   :  { %2132 = vmatmul.mubr.msk.f32.gmra.mrb[6].mxu0 %vm49_vm1, %v37_v21 }
  0x1a   :  { %2173 = vmatprep.mubr.msk.f32.mxu0 %vm2460_vm0, %v2461_v4 }
  0xdb   :  { %v264_v22 = vpop.f32.mrb[0].mxu1 }
  0xdc   :  { %v2140_v23 = vpop.f32.mrb[1].mxu1 }
  0xdf   :  { %v367_v25 = vpop.f32.mrb[2].mxu1 }
  0xe0   :  { %v2124_v26 = vpop.f32.mrb[0].mxu0  ;;  %372 = vrot.lane.b32.xlu0 %v367_v25, %s2462_s14  ;;  %v2147_v28 = vpop.f32.mrb[3].mxu1 }
  0xe1   :  { %v2598_v27 = vadd.f32 %v2124_v26, %v2008_v24  ;;  %v140_v29 = vpop.f32.mrb[1].mxu0 }
  0xe2   :  { %v2600_v30 = vadd.f32 %v2008_v24, %v140_v29 }
  0xe4   :  { %v268_v31 = vadd.f32 %v264_v22, %v2600_v30  ;;  %v2127_v32 = vpop.f32.mrb[2].mxu0 }
  0xe5   :  { %v2603_v33 = vadd.f32 %v2127_v32, %v2008_v24  ;;  %v150_v34 = vpop.f32.mrb[3].mxu0 }
  0xe6   :  { %2331 = vtanh.f32 %v268_v31  ;;  %v2605_v35 = vadd.f32 %v2008_v24, %v150_v34  ;;  %v2017_v46 = vmul.f32 -1.442695, %v268_v31  ;;  %v625_v31 = vsel %vm624_vm7, 1, %v2463_v36 }
  0xe8   :  { %v2130_v37 = vpop.f32.mrb[4].mxu0  ;;  %2333 = vpow2.f32 %v2017_v46 }
  0xe9   :  { %v2609_v38 = vadd.f32 %v2130_v37, %v2008_v24  ;;  %v160_v39 = vpop.f32.mrb[5].mxu0 }
  0xea   :  { %v2611_v40 = vadd.f32 %v2008_v24, %v160_v39 }
  0xec   :  { %v2133_v41 = vpop.f32.mrb[6].mxu0 }
  0xed   :  { %v2613_v42 = vadd.f32 %v2133_v41, %v2008_v24  ;;  %v170_v43 = vpop.f32.mrb[7].mxu0 }
  0xee   :  { %v2615_v44 = vadd.f32 %v2008_v24, %v170_v43 }
  0xf0   :  { %v2332_v45 = vpop.eup %2331 }
  0xf1   :  { %278 = vrot.lane.b32.xlu0 %v2332_v45, %s2464_s1 }
  0xf2   :  { %v2334_v47 = vpop.eup %2333 }
  0xf3   :  { %v272_v50 = vadd.f32 1.0, %v2334_v47 }
 0x152   :  { %v373_v48 = vpop.permute.xlu0 %372 }
 0x153   :  { %v375_v49 = vadd.f32 %v373_v48, %v2613_v42 }
 0x155   :  { %2335 = vtanh.f32 %v375_v49  ;;  %v2018_v57 = vmul.f32 -1.442695, %v375_v49 }
 0x156   :  { %2337 = vrcp.f32 %v272_v50 }
 0x157   :  { %2339 = vpow2.f32 %v2018_v57 }
 0x15f   :  { %v2336_v51 = vpop.eup %2335 }
 0x160   :  { %385 = vrot.lane.b32.xlu1 %v2336_v51, %s2464_s1  ;;  %v2338_v53 = vpop.eup %2337 }
 0x161   :  { %v2340_v58 = vpop.eup %2339  ;;  %v276_v63 = vmul.f32 0.0, %v2338_v53 }
 0x162   :  { %v379_v59 = vadd.f32 1.0, %v2340_v58 }
 0x163   :  { %v279_v54 = vpop.permute.xlu0 %278 }
 0x164   :  { %v281_v55 = vmul.f32 %v2338_v53, %v279_v54  ;;  %2341 = vrcp.f32 %v379_v59 }
 0x166   :  { %283 = vrot.lane.b32.xlu1 %v281_v55, %s2465_s16 }
 0x16a   :  { %296 = vperm.xlu1 %2329, %v294_v56  }
 0x16e   :  { %v2342_v60 = vpop.eup %2341 }
 0x16f   :  { %v383_v6 = vmul.f32 0.0, %v2342_v60 }
 0x1d2   :  { %v386_v61 = vpop.permute.xlu1 %385 }
 0x1d3   :  { %v388_v62 = vmul.f32 %v2342_v60, %v386_v61 }
 0x1d5   :  { %390 = vrot.lane.b32.xlu0 %v388_v62, %s2465_s16 }
 0x1d8   :  { %v284_v2 = vpop.permute.xlu1 %283 }
 0x1d9   :  { %v2631_v3 = vadd.f32 %v284_v2, %v276_v63  ;;  %403 = vperm.xlu0 %2330, %v401_v1   ;;  %v513_v63 = vsel %vm512_vm9, 1, %v2463_v36 }
 0x1db   :  { %2343 = vtanh.f32 %v2631_v3 }
 0x1e5   :  { %v2344_v5 = vpop.eup %2343 }
 0x1e6   :  { %289 = vrot.lane.b32.xlu1 %v2344_v5, %s2465_s16 }
 0x1e9   :  { %v2635_v10 = vpop.permute.xlu1 %296 }
 0x1ea   :  { %vm298_vm4 = vcmp.eq.s32.totalorder %v2635_v10, 1 }
 0x1eb   :  { %v2698_v2 = vsel %vm298_vm4, %v2631_v3, 0.0 }
 0x247   :  { %v391_v7 = vpop.permute.xlu0 %390 }
 0x248   :  { %v393_v8 = vadd.f32 %v391_v7, %v383_v6 }
 0x24a   :  { %2345 = vtanh.f32 %v393_v8 }
 0x254   :  { %v2346_v11 = vpop.eup %2345 }
 0x255   :  { %396 = vrot.lane.b32.xlu1 %v2346_v11, %s2465_s16 }
 0x258   :  { %v290_v12 = vpop.permute.xlu1 %289  ;;  %v2645_v16 = vpop.permute.xlu0 %403 }
 0x259   :  { %v292_v13 = vmul.f32 %v2338_v53, %v290_v12  ;;  %vm405_vm5 = vcmp.eq.s32.totalorder %v2645_v16, 1  ;;  %v1921_v16 = vld [vmem:[%s3005_s6 + $0x10] sm:$0xff] }
 0x25a   :  { %v2669_v45 = vsel %vm405_vm5, %v393_v8, 0.0 }
 0x25b   :  { %v2641_v15 = vsel %vm298_vm4, %v292_v13, 0.0 }
 0x25c   :  { %413 = vrot.lane.b32.xlu0 %v2641_v15, %s2466_s0 }
 0x2c7   :  { %v397_v17 = vpop.permute.xlu1 %396 }
 0x2c8   :  { %v399_v18 = vmul.f32 %v2342_v60, %v397_v17 }
 0x2ca   :  { %v406_v19 = vsel %vm405_vm5, %v399_v18, 0.0 }
 0x2cb   :  { %521 = vrot.lane.b32.xlu1 %v406_v19, %s2467_s17 }
 0x2ce   :  { %v414_v20 = vpop.permute.xlu0 %413 }
 0x2cf   :  { %2153 = vmatmul.mubr.msk.f32.vlgmr.msra.gmra.mrb[4].mxu1 %vm194_vm6, %v414_v20 }
 0x2d0   :  { %2276 = vmatpush3.bf16.msra.mxu1 %v2548_v14  ;;  %2159 = vmatprep.mubr.msk.f32.mxu1 %vm2460_vm0, %v2461_v4 }
 0x2d1   :  { %2277 = vmatprep.subr.bf16.mxu1 %v2459_v0 }
 0x33d   :  { %v522_v21 = vpop.permute.xlu1 %521 }
 0x33e   :  { %2160 = vmatmul.mubr.msk.f32.vlgmr.msra.gmra.mrb[6].mxu1 %vm194_vm6, %v522_v21  ;;  %v849_v21 = vsel %vm848_vm11, 1, %v2463_v36 }
 0x33f   :  { %2279 = vmatpush3.bf16.msra.mxu1 %v2535_v9  ;;  %2166 = vmatprep.mubr.msk.f32.mxu1 %vm2460_vm0, %v2461_v4 }
 0x340   :  { %2283 = vmatprep.subr.bf16.mxu1 %v2459_v0 }
 0x3a2   :  { %v483_v22 = vpop.f32.mrb[4].mxu1 }
 0x3a3   :  { %v2154_v23 = vpop.f32.mrb[5].mxu1  ;;  %v487_v49 = vadd.f32 %v483_v22, %v2598_v27 }
 0x3a5   :  { %v2020_v53 = vmul.f32 -1.442695, %v487_v49 }
 0x411   :  { %v591_v24 = vpop.f32.mrb[6].mxu1 }
 0x412   :  { %596 = vrot.lane.b32.xlu0 %v591_v24, %s2462_s14  ;;  %v2161_v25 = vpop.f32.mrb[7].mxu1 }
 0x484   :  { %v597_v26 = vpop.permute.xlu0 %596 }
 0x485   :  { %v599_v28 = vadd.f32 %v597_v26, %v2615_v44 }
 0x487   :  { %2347 = vtanh.f32 %v599_v28  ;;  %v2022_v32 = vmul.f32 -1.442695, %v599_v28 }
 0x489   :  { %2349 = vpow2.f32 %v2022_v32 }
 0x491   :  { %v2348_v29 = vpop.eup %2347 }
 0x492   :  { %609 = vrot.lane.b32.xlu1 %v2348_v29, %s2464_s1 }
 0x493   :  { %v2350_v34 = vpop.eup %2349 }
 0x494   :  { %v603_v37 = vadd.f32 1.0, %v2350_v34 }
 0x496   :  { %627 = vperm.xlu1 %2329, %v625_v31   ;;  %2351 = vrcp.f32 %v603_v37 }
 0x4a0   :  { %v2352_v39 = vpop.eup %2351 }
 0x4a1   :  { %v607_v46 = vmul.f32 %v2352_v39, %v2669_v45 }
 0x504   :  { %v610_v41 = vpop.permute.xlu1 %609 }
 0x505   :  { %v612_v43 = vmul.f32 %v2352_v39, %v610_v41 }
 0x507   :  { %614 = vrot.lane.b32.xlu0 %v612_v43, %s2465_s16 }
 0x515   :  { %v2678_v56 = vpop.permute.xlu1 %627 }
 0x516   :  { %vm629_vm8 = vcmp.eq.s32.totalorder %v2678_v56, 1 }
 0x579   :  { %v615_v47 = vpop.permute.xlu0 %614 }
 0x57a   :  { %v2672_v48 = vadd.f32 %v615_v47, %v607_v46 }
 0x57c   :  { %2353 = vtanh.f32 %v2672_v48  ;;  %v2730_v31 = vsel %vm629_vm8, %v2672_v48, %v2669_v45  ;;  %v737_v45 = vsel %vm736_vm12, 1, %v2463_v36 }
 0x57d   :  { %2355 = vtanh.f32 %v487_v49 }
 0x57e   :  { %2357 = vpow2.f32 %v2020_v53 }
 0x586   :  { %v2354_v50 = vpop.eup %2353 }
 0x587   :  { %620 = vrot.lane.b32.xlu0 %v2354_v50, %s2465_s16  ;;  %v2356_v51 = vpop.eup %2355 }
 0x588   :  { %v2358_v54 = vpop.eup %2357 }
 0x589   :  { %v491_v55 = vadd.f32 1.0, %v2358_v54 }
 0x58b   :  { %497 = vrot.lane.b32.xlu0 %v2356_v51, %s2464_s1  ;;  %2359 = vrcp.f32 %v491_v55 }
 0x595   :  { %v2360_v60 = vpop.eup %2359 }
 0x596   :  { %v495_v6 = vmul.f32 %v2360_v60, %v2698_v2 }
 0x5f9   :  { %v621_v57 = vpop.permute.xlu0 %620 }
 0x5fa   :  { %v623_v58 = vmul.f32 %v2352_v39, %v621_v57 }
 0x5fc   :  { %v2683_v59 = vsel %vm629_vm8, %v623_v58, %v406_v19 }
 0x5fd   :  { %745 = vrot.lane.b32.xlu1 %v2683_v59, %s2467_s17  ;;  %v498_v61 = vpop.permute.xlu0 %497 }
 0x5fe   :  { %v500_v62 = vmul.f32 %v2360_v60, %v498_v61 }
 0x601   :  { %502 = vrot.lane.b32.xlu1 %v500_v62, %s2465_s16 }
 0x605   :  { %515 = vperm.xlu1 %2329, %v513_v63  }
 0x66f   :  { %v746_v1 = vpop.permute.xlu1 %745 }
 0x670   :  { %2174 = vmatmul.mubr.msk.f32.vlgmr.msra.gmra.mrb[8].mxu0 %vm194_vm6, %v746_v1 }
 0x671   :  { %2288 = vmatpush3.bf16.msra.mxu0 %v2548_v14  ;;  %2187 = vmatprep.mubr.msk.f32.mxu0 %vm2460_vm0, %v2461_v4 }
 0x672   :  { %2292 = vmatprep.subr.bf16.mxu0 %v2459_v0 }
 0x673   :  { %v503_v5 = vpop.permute.xlu1 %502 }
 0x674   :  { %v2701_v7 = vadd.f32 %v503_v5, %v495_v6 }
 0x676   :  { %2361 = vtanh.f32 %v2701_v7 }
 0x680   :  { %v2362_v12 = vpop.eup %2361 }
 0x684   :  { %v2707_v18 = vpop.permute.xlu1 %515 }
 0x685   :  { %vm517_vm10 = vcmp.eq.s32.totalorder %v2707_v18, 1  ;;  %v1922_v18 = vld [vmem:[%s3005_s6 + $0x18] sm:$0xff] }
 0x743   :  { %v815_v8 = vpop.f32.mrb[8].mxu0 }
 0x744   :  { %820 = vrot.lane.b32.xlu0 %v815_v8, %s2462_s14  ;;  %v2175_v11 = vpop.f32.mrb[9].mxu0 }
 0x748   :  { %508 = vrot.lane.b32.xlu0 %v2362_v12, %s2465_s16 }
 0x7b6   :  { %v821_v13 = vpop.permute.xlu0 %820 }
 0x7b7   :  { %v823_v17 = vadd.f32 %v821_v13, %v2609_v38 }
 0x7b9   :  { %2363 = vtanh.f32 %v823_v17  ;;  %v2026_v23 = vmul.f32 -1.442695, %v823_v17 }
 0x7ba   :  { %v509_v3 = vpop.permute.xlu0 %508 }
 0x7bb   :  { %v511_v19 = vmul.f32 %v2360_v60, %v509_v3  ;;  %2365 = vpow2.f32 %v2026_v23 }
 0x7bd   :  { %v2714_v20 = vsel %vm517_vm10, %v511_v19, %v2641_v15 }
 0x7be   :  { %637 = vrot.lane.b32.xlu0 %v2714_v20, %s2466_s0 }
 0x7c2   :  { %851 = vperm.xlu0 %2330, %v849_v21  }
 0x7c3   :  { %v2364_v22 = vpop.eup %2363 }
 0x7c4   :  { %833 = vrot.lane.b32.xlu1 %v2364_v22, %s2464_s1 }
 0x7c5   :  { %v2366_v24 = vpop.eup %2365 }
 0x7c6   :  { %v827_v25 = vadd.f32 1.0, %v2366_v24 }
 0x7c8   :  { %2367 = vrcp.f32 %v827_v25 }
 0x7d2   :  { %v2368_v15 = vpop.eup %2367 }
 0x7d3   :  { %v831_v32 = vmul.f32 %v2368_v15, %v2730_v31 }
 0x830   :  { %v638_v26 = vpop.permute.xlu0 %637 }
 0x831   :  { %2167 = vmatmul.mubr.msk.f32.vlgmr.msra.gmra.mrb[8].mxu1 %vm194_vm6, %v638_v26 }
 0x832   :  { %2285 = vmatpush3.bf16.msra.mxu1 %v2535_v9  ;;  %2180 = vmatprep.mubr.msk.f32.mxu1 %vm2460_vm0, %v2461_v4 }
 0x833   :  { %2289 = vmatprep.subr.bf16.mxu1 %v2459_v0 }
 0x836   :  { %v834_v28 = vpop.permute.xlu1 %833 }
 0x837   :  { %v836_v29 = vmul.f32 %v2368_v15, %v834_v28 }
 0x839   :  { %838 = vrot.lane.b32.xlu1 %v836_v29, %s2465_s16 }
 0x841   :  { %v2741_v48 = vpop.permute.xlu0 %851 }
 0x842   :  { %vm853_vm13 = vcmp.eq.s32.totalorder %v2741_v48, 1 }
 0x8ab   :  { %v839_v34 = vpop.permute.xlu1 %838 }
 0x8ac   :  { %v2733_v37 = vadd.f32 %v839_v34, %v831_v32 }
 0x8ae   :  { %2369 = vtanh.f32 %v2733_v37  ;;  %v2793_v29 = vsel %vm853_vm13, %v2733_v37, %v2730_v31  ;;  %v961_v31 = vsel %vm960_vm2, 1, %v2463_v36 }
 0x8b8   :  { %v2370_v39 = vpop.eup %2369 }
 0x8b9   :  { %844 = vrot.lane.b32.xlu1 %v2370_v39, %s2465_s16 }
 0x904   :  { %v707_v41 = vpop.f32.mrb[8].mxu1 }
 0x905   :  { %v711_v43 = vadd.f32 %v707_v41, %v2605_v35  ;;  %v2168_v46 = vpop.f32.mrb[9].mxu1 }
 0x907   :  { %2371 = vtanh.f32 %v711_v43  ;;  %v2024_v53 = vmul.f32 -1.442695, %v711_v43 }
 0x909   :  { %2373 = vpow2.f32 %v2024_v53 }
 0x911   :  { %v2372_v47 = vpop.eup %2371 }
 0x912   :  { %721 = vrot.lane.b32.xlu1 %v2372_v47, %s2464_s1 }
 0x913   :  { %v2374_v54 = vpop.eup %2373 }
 0x914   :  { %v715_v55 = vadd.f32 1.0, %v2374_v54 }
 0x916   :  { %739 = vperm.xlu1 %2329, %v737_v45   ;;  %2375 = vrcp.f32 %v715_v55 }
 0x920   :  { %v2376_v57 = vpop.eup %2375 }
 0x92b   :  { %v845_v49 = vpop.permute.xlu1 %844 }
 0x92c   :  { %v847_v50 = vmul.f32 %v2368_v15, %v845_v49 }
 0x92e   :  { %v2747_v51 = vsel %vm853_vm13, %v847_v50, %v2683_v59  ;;  %v2761_v59 = vsel %vm517_vm10, %v2701_v7, %v2698_v2 }
 0x92f   :  { %969 = vrot.lane.b32.xlu0 %v2747_v51, %s2467_s17  ;;  %v719_v62 = vmul.f32 %v2376_v57, %v2761_v59 }
 0x984   :  { %v722_v58 = vpop.permute.xlu1 %721 }
 0x985   :  { %v724_v60 = vmul.f32 %v2376_v57, %v722_v58 }
 0x987   :  { %726 = vrot.lane.b32.xlu0 %v724_v60, %s2465_s16 }
 0x995   :  { %v2769_v11 = vpop.permute.xlu1 %739 }
 0x996   :  { %vm741_vm14 = vcmp.eq.s32.totalorder %v2769_v11, 1 }
 0x9a1   :  { %v970_v61 = vpop.permute.xlu0 %969 }
 0x9a2   :  { %2188 = vmatmul.mubr.msk.f32.vlgmr.msra.gmra.mrb[10].mxu0 %vm194_vm6, %v970_v61 }
 0x9a3   :  { %2294 = vmatpush3.bf16.msra.mxu0 %v2548_v14  ;;  %2201 = vmatprep.mubr.msk.f32.mxu0 %vm2460_vm0, %v2461_v4 }
 0x9a4   :  { %2298 = vmatprep.subr.bf16.mxu0 %v2459_v0 }
 0x9f9   :  { %v727_v63 = vpop.permute.xlu0 %726 }
 0x9fa   :  { %v2764_v1 = vadd.f32 %v727_v63, %v719_v62 }
 0x9fc   :  { %2377 = vtanh.f32 %v2764_v1  ;;  %v2820_v58 = vsel %vm741_vm14, %v2764_v1, %v2761_v59 }
 0xa06   :  { %v2378_v5 = vpop.eup %2377 }
 0xa07   :  { %732 = vrot.lane.b32.xlu0 %v2378_v5, %s2465_s16 }
 0xa75   :  { %v1039_v6 = vpop.f32.mrb[10].mxu0 }
 0xa76   :  { %v2189_v8 = vpop.f32.mrb[11].mxu0  ;;  %1044 = vrot.lane.b32.xlu1 %v1039_v6, %s2462_s14 }
 0xa79   :  { %v733_v12 = vpop.permute.xlu0 %732 }
 0xa7a   :  { %v735_v13 = vmul.f32 %v2376_v57, %v733_v12 }
 0xa7c   :  { %v2775_v2 = vsel %vm741_vm14, %v735_v13, %v2714_v20  ;;  %v1073_v20 = vsel %vm1072_vm15, 1, %v2463_v36 }
 0xa7d   :  { %861 = vrot.lane.b32.xlu0 %v2775_v2, %s2466_s0 }
 0xae8   :  { %v1045_v7 = vpop.permute.xlu1 %1044 }
 0xae9   :  { %v1047_v17 = vadd.f32 %v1045_v7, %v2611_v40 }
 0xaeb   :  { %2379 = vtanh.f32 %v1047_v17  ;;  %v2030_v21 = vmul.f32 -1.442695, %v1047_v17 }
 0xaed   :  { %2381 = vpow2.f32 %v2030_v21 }
 0xaef   :  { %v862_v3 = vpop.permute.xlu0 %861 }
 0xaf0   :  { %2181 = vmatmul.mubr.msk.f32.vlgmr.msra.gmra.mrb[10].mxu1 %vm194_vm6, %v862_v3 }
 0xaf1   :  { %2291 = vmatpush3.bf16.msra.mxu1 %v2535_v9  ;;  %2194 = vmatprep.mubr.msk.f32.mxu1 %vm2460_vm0, %v2461_v4 }
 0xaf2   :  { %2295 = vmatprep.subr.bf16.mxu1 %v2459_v0 }
 0xaf5   :  { %v2380_v19 = vpop.eup %2379 }
 0xaf6   :  { %1057 = vrot.lane.b32.xlu1 %v2380_v19, %s2464_s1 }
 0xaf7   :  { %v2382_v22 = vpop.eup %2381 }
 0xaf8   :  { %v1051_v23 = vadd.f32 1.0, %v2382_v22 }
 0xafa   :  { %1075 = vperm.xlu1 %2329, %v1073_v20   ;;  %2383 = vrcp.f32 %v1051_v23 }
 0xb04   :  { %v2384_v24 = vpop.eup %2383 }
 0xb05   :  { %v1055_v32 = vmul.f32 %v2384_v24, %v2793_v29 }
 0xb68   :  { %v1058_v25 = vpop.permute.xlu1 %1057 }
 0xb69   :  { %v1060_v26 = vmul.f32 %v2384_v24, %v1058_v25 }
 0xb6b   :  { %1062 = vrot.lane.b32.xlu0 %v1060_v26, %s2465_s16 }
 0xb79   :  { %v2804_v49 = vpop.permute.xlu1 %1075 }
 0xb7a   :  { %vm1077_vm3 = vcmp.eq.s32.totalorder %v2804_v49, 1 }
 0xbc3   :  { %v931_v15 = vpop.f32.mrb[10].mxu1 }
 0xbc4   :  { %v2182_v28 = vpop.f32.mrb[11].mxu1  ;;  %v935_v41 = vadd.f32 %v931_v15, %v2603_v33 }
 0xbc6   :  { %v2028_v37 = vmul.f32 -1.442695, %v935_v41 }
 0xbdd   :  { %v1063_v34 = vpop.permute.xlu0 %1062 }
 0xbde   :  { %v2796_v39 = vadd.f32 %v1063_v34, %v1055_v32 }
 0xbe0   :  { %2385 = vtanh.f32 %v2796_v39  ;;  %v2853_v15 = vsel %vm1077_vm3, %v2796_v39, %v2793_v29 }
 0xbe1   :  { %2387 = vtanh.f32 %v935_v41 }
 0xbe2   :  { %2389 = vpow2.f32 %v2028_v37 }
 0xbea   :  { %v2386_v43 = vpop.eup %2385 }
 0xbeb   :  { %1068 = vrot.lane.b32.xlu0 %v2386_v43, %s2465_s16  ;;  %v2388_v46 = vpop.eup %2387 }
 0xbec   :  { %v2390_v47 = vpop.eup %2389 }
 0xbed   :  { %v939_v45 = vadd.f32 1.0, %v2390_v47 }
 0xbef   :  { %945 = vrot.lane.b32.xlu0 %v2388_v46, %s2464_s1  ;;  %2391 = vrcp.f32 %v939_v45 }
 0xbf3   :  { %963 = vperm.xlu0 %2330, %v961_v31  }
 0xbf9   :  { %v2392_v54 = vpop.eup %2391 }
 0xc5d   :  { %v1069_v50 = vpop.permute.xlu0 %1068 }
 0xc5e   :  { %v1071_v53 = vmul.f32 %v2384_v24, %v1069_v50 }
 0xc60   :  { %v2810_v52 = vsel %vm1077_vm3, %v1071_v53, %v2747_v51  ;;  %v943_v51 = vmul.f32 %v2392_v54, %v2820_v58 }
 0xc61   :  { %1183 = vrot.lane.b32.xlu1 %v2810_v52, %s2467_s17  ;;  %v946_v36 = vpop.permute.xlu0 %945 }
 0xc62   :  { %v948_v55 = vmul.f32 %v2392_v54, %v946_v36 }
 0xc65   :  { %950 = vrot.lane.b32.xlu1 %v948_v55, %s2465_s16 }
 0xc72   :  { %v2828_v63 = vpop.permute.xlu0 %963 }
 0xc73   :  { %vm965_vm7 = vcmp.eq.s32.totalorder %v2828_v63, 1 }
 0xcd3   :  { %v1184_v57 = vpop.permute.xlu1 %1183 }
 0xcd4   :  { %2202 = vmatmul.mubr.msk.f32.vlgmr.msra.gmra.mrb[12].mxu0 %vm194_vm6, %v1184_v57 }
 0xcd5   :  { %2300 = vmatpush3.bf16.msra.mxu0 %v2548_v14  ;;  %2215 = vmatprep.mubr.msk.f32.mxu0 %vm2460_vm0, %v2461_v4 }
 0xcd6   :  { %2304 = vmatprep.subr.bf16.mxu0 %v2459_v0 }
 0xcd7   :  { %v951_v60 = vpop.permute.xlu1 %950 }
 0xcd8   :  { %v953_v61 = vadd.f32 %v951_v60, %v943_v51 }
 0xcda   :  { %2393 = vtanh.f32 %v953_v61  ;;  %v967_v45 = vsel %vm965_vm7, %v953_v61, %v2820_v58 }
 0xce4   :  { %v2394_v62 = vpop.eup %2393 }
 0xce5   :  { %956 = vrot.lane.b32.xlu1 %v2394_v62, %s2465_s16 }
 0xd57   :  { %v957_v5 = vpop.permute.xlu1 %956 }
 0xd58   :  { %v959_v59 = vmul.f32 %v2392_v54, %v957_v5 }
 0xd5a   :  { %v2834_v1 = vsel %vm965_vm7, %v959_v59, %v2775_v2 }
 0xd5b   :  { %1081 = vrot.lane.b32.xlu0 %v2834_v1, %s2466_s0 }
 0xda7   :  { %v1253_v6 = vpop.f32.mrb[12].mxu0 }
 0xda8   :  { %v2203_v8 = vpop.f32.mrb[13].mxu0  ;;  %1258 = vrot.lane.b32.xlu1 %v1253_v6, %s2462_s14 }
 0xdcd   :  { %v1082_v12 = vpop.permute.xlu0 %1081 }
 0xdce   :  { %2195 = vmatmul.mubr.msk.f32.vlgmr.msra.gmra.mrb[12].mxu1 %vm194_vm6, %v1082_v12 }
 0xdcf   :  { %2297 = vmatpush3.bf16.msra.mxu1 %v2535_v9  ;;  %2208 = vmatprep.mubr.msk.f32.mxu1 %vm2460_vm0, %v2461_v4 }
 0xdd0   :  { %2301 = vmatprep.subr.bf16.mxu1 %v2459_v0 }
 0xe1a   :  { %v1259_v13 = vpop.permute.xlu1 %1258 }
 0xe1b   :  { %v1261_v2 = vadd.f32 %v1259_v13, %v2603_v33 }
 0xe1d   :  { %2395 = vtanh.f32 %v1261_v2  ;;  %v2034_v17 = vmul.f32 -1.442695, %v1261_v2 }
 0xe1f   :  { %2397 = vpow2.f32 %v2034_v17 }
 0xe27   :  { %v2396_v7 = vpop.eup %2395 }
 0xe28   :  { %1271 = vrot.lane.b32.xlu0 %v2396_v7, %s2464_s1 }
 0xe29   :  { %v2398_v3 = vpop.eup %2397 }
 0xe2a   :  { %v1265_v19 = vadd.f32 1.0, %v2398_v3 }
 0xe2c   :  { %2399 = vrcp.f32 %v1265_v19 }
 0xe36   :  { %v2400_v20 = vpop.eup %2399 }
 0xe37   :  { %v1269_v28 = vmul.f32 %v2400_v20, %v2853_v15 }
 0xe9a   :  { %v1272_v21 = vpop.permute.xlu0 %1271 }
 0xe9b   :  { %v1274_v22 = vmul.f32 %v2400_v20, %v1272_v21 }
 0xe9d   :  { %1276 = vrot.lane.b32.xlu1 %v1274_v22, %s2465_s16 }
 0xea1   :  { %v1151_v23 = vpop.f32.mrb[12].mxu1 }
 0xea2   :  { %v1155_v24 = vadd.f32 %v1151_v23, %v2611_v40  ;;  %v2196_v25 = vpop.f32.mrb[13].mxu1 }
 0xea4   :  { %2401 = vtanh.f32 %v1155_v24  ;;  %v2032_v26 = vmul.f32 -1.442695, %v1155_v24 }
 0xea6   :  { %2403 = vpow2.f32 %v2032_v26 }
 0xeae   :  { %v2402_v33 = vpop.eup %2401 }
 0xeaf   :  { %1165 = vrot.lane.b32.xlu1 %v2402_v33, %s2464_s1 }
 0xeb0   :  { %v2404_v34 = vpop.eup %2403 }
 0xeb1   :  { %v1159_v40 = vadd.f32 1.0, %v2404_v34 }
 0xf0f   :  { %v1277_v32 = vpop.permute.xlu1 %1276 }
 0xf10   :  { %v2856_v41 = vadd.f32 %v1277_v32, %v1269_v28 }
 0xf12   :  { %2405 = vtanh.f32 %v2856_v41  ;;  %v2897_v24 = vsel %vm965_vm7, %v2856_v41, %v2853_v15 }
 0xf13   :  { %2407 = vrcp.f32 %v1159_v40 }
 0xf1c   :  { %v2406_v43 = vpop.eup %2405 }
 0xf1d   :  { %1282 = vrot.lane.b32.xlu0 %v2406_v43, %s2465_s16  ;;  %v2408_v46 = vpop.eup %2407 }
 0xf1e   :  { %v1163_v50 = vmul.f32 %v2408_v46, %v967_v45 }
 0xf21   :  { %v1166_v31 = vpop.permute.xlu1 %1165 }
 0xf22   :  { %v1168_v37 = vmul.f32 %v2408_v46, %v1166_v31 }
 0xf24   :  { %1170 = vrot.lane.b32.xlu1 %v1168_v37, %s2465_s16 }
 0xf8f   :  { %v1283_v29 = vpop.permute.xlu0 %1282 }
 0xf90   :  { %v1285_v39 = vmul.f32 %v2400_v20, %v1283_v29 }
 0xf92   :  { %v2864_v47 = vsel %vm965_vm7, %v1285_v39, %v2810_v52 }
 0xf93   :  { %1391 = vrot.lane.b32.xlu0 %v2864_v47, %s2467_s17 }
 0xf96   :  { %v1171_v53 = vpop.permute.xlu1 %1170 }
 0xf97   :  { %v1173_v54 = vadd.f32 %v1171_v53, %v1163_v50 }
 0xf99   :  { %2409 = vtanh.f32 %v1173_v54  ;;  %v1181_v32 = vsel %vm1077_vm3, %v1173_v54, %v967_v45 }
 0xfa3   :  { %v2410_v36 = vpop.eup %2409 }
 0xfa4   :  { %1176 = vrot.lane.b32.xlu0 %v2410_v36, %s2465_s16 }
0x1005   :  { %v1392_v55 = vpop.permute.xlu0 %1391 }
0x1006   :  { %2216 = vmatmul.mubr.msk.f32.vlgmr.msra.gmra.mrb[14].mxu0 %vm194_vm6, %v1392_v55 }
0x1007   :  { %2306 = vmatpush3.bf16.msra.mxu0 %v2548_v14  ;;  %2229 = vmatprep.mubr.msk.f32.mxu0 %vm2460_vm0, %v2461_v4 }
0x1008   :  { %2310 = vmatprep.subr.bf16.mxu0 %v2459_v0 }
0x1016   :  { %v1177_v52 = vpop.permute.xlu0 %1176 }
0x1017   :  { %v1179_v57 = vmul.f32 %v2408_v46, %v1177_v52 }
0x1019   :  { %v1180_v58 = vsel %vm1077_vm3, %v1179_v57, %v2834_v1 }
0x101a   :  { %1289 = vrot.lane.b32.xlu1 %v1180_v58, %s2466_s0 }
0x108c   :  { %v1290_v51 = vpop.permute.xlu1 %1289 }
0x108d   :  { %2209 = vmatmul.mubr.msk.f32.vlgmr.msra.gmra.mrb[14].mxu1 %vm194_vm6, %v1290_v51 }
0x108e   :  { %2303 = vmatpush3.bf16.msra.mxu1 %v2535_v9  ;;  %2222 = vmatprep.mubr.msk.f32.mxu1 %vm2460_vm0, %v2461_v4 }
0x108f   :  { %2307 = vmatprep.subr.bf16.mxu1 %v2459_v0 }
0x10d9   :  { %v1461_v60 = vpop.f32.mrb[14].mxu0 }
0x10da   :  { %v2217_v61 = vpop.f32.mrb[15].mxu0  ;;  %1466 = vrot.lane.b32.xlu0 %v1461_v60, %s2462_s14 }
0x114c   :  { %v1467_v62 = vpop.permute.xlu0 %1466 }
0x114d   :  { %v1469_v5 = vadd.f32 %v1467_v62, %v2605_v35 }
0x114f   :  { %2411 = vtanh.f32 %v1469_v5  ;;  %v2038_v13 = vmul.f32 -1.442695, %v1469_v5 }
0x1159   :  { %v2412_v59 = vpop.eup %2411 }
0x115a   :  { %1479 = vrot.lane.b32.xlu1 %v2412_v59, %s2464_s1 }
0x1160   :  { %v1359_v1 = vpop.f32.mrb[14].mxu1 }
0x1161   :  { %v1363_v6 = vadd.f32 %v1359_v1, %v2609_v38  ;;  %v2210_v8 = vpop.f32.mrb[15].mxu1 }
0x1163   :  { %2413 = vtanh.f32 %v1363_v6  ;;  %v2036_v17 = vmul.f32 -1.442695, %v1363_v6 }
0x1164   :  { %2415 = vpow2.f32 %v2038_v13 }
0x116d   :  { %v2414_v12 = vpop.eup %2413 }
0x116e   :  { %1373 = vrot.lane.b32.xlu1 %v2414_v12, %s2464_s1  ;;  %v2416_v2 = vpop.eup %2415 }
0x116f   :  { %v1473_v7 = vadd.f32 1.0, %v2416_v2 }
0x1171   :  { %2417 = vrcp.f32 %v1473_v7 }
0x1172   :  { %2419 = vpow2.f32 %v2036_v17 }
0x117b   :  { %v2418_v35 = vpop.eup %2417 }
0x117c   :  { %v2420_v20 = vpop.eup %2419  ;;  %v1477_v25 = vmul.f32 %v2418_v35, %v2897_v24 }
0x117d   :  { %v1367_v21 = vadd.f32 1.0, %v2420_v20 }
0x117f   :  { %2421 = vrcp.f32 %v1367_v21 }
0x1189   :  { %v2422_v38 = vpop.eup %2421 }
0x118a   :  { %v1371_v34 = vmul.f32 %v2422_v38, %v1181_v32 }
0x11cc   :  { %v1480_v3 = vpop.permute.xlu1 %1479 }
0x11cd   :  { %v1482_v19 = vmul.f32 %v2418_v35, %v1480_v3 }
0x11cf   :  { %1484 = vrot.lane.b32.xlu0 %v1482_v19, %s2465_s16 }
0x11e0   :  { %v1374_v22 = vpop.permute.xlu1 %1373 }
0x11e1   :  { %v1376_v23 = vmul.f32 %v2422_v38, %v1374_v22 }
0x11e3   :  { %1378 = vrot.lane.b32.xlu1 %v1376_v23, %s2465_s16 }
0x1241   :  { %v1485_v33 = vpop.permute.xlu0 %1484 }
0x1242   :  { %v2900_v26 = vadd.f32 %v1485_v33, %v1477_v25 }
0x1244   :  { %2423 = vtanh.f32 %v2900_v26  ;;  %v2940_v7 = vsel %vm741_vm14, %v2900_v26, %v2897_v24 }
0x124e   :  { %v2424_v28 = vpop.eup %2423 }
0x124f   :  { %1490 = vrot.lane.b32.xlu0 %v2424_v28, %s2465_s16 }
0x1255   :  { %v1379_v40 = vpop.permute.xlu1 %1378 }
0x1256   :  { %v1381_v43 = vadd.f32 %v1379_v40, %v1371_v34 }
0x1258   :  { %2425 = vtanh.f32 %v1381_v43  ;;  %v1389_v6 = vsel %vm853_vm13, %v1381_v43, %v1181_v32 }
0x1262   :  { %v2426_v63 = vpop.eup %2425 }
0x1263   :  { %1384 = vrot.lane.b32.xlu1 %v2426_v63, %s2465_s16 }
0x12c1   :  { %v1491_v15 = vpop.permute.xlu0 %1490 }
0x12c2   :  { %v1493_v41 = vmul.f32 %v2418_v35, %v1491_v15 }
0x12c4   :  { %v2910_v46 = vsel %vm741_vm14, %v1493_v41, %v2864_v47 }
0x12c5   :  { %1599 = vrot.lane.b32.xlu0 %v2910_v46, %s2467_s17 }
0x12d5   :  { %v1385_v31 = vpop.permute.xlu1 %1384 }
0x12d6   :  { %v1387_v49 = vmul.f32 %v2422_v38, %v1385_v31 }
0x12d8   :  { %v1388_v37 = vsel %vm853_vm13, %v1387_v49, %v1180_v58 }
0x12d9   :  { %1497 = vrot.lane.b32.xlu0 %v1388_v37, %s2466_s0 }
0x1337   :  { %v1600_v29 = vpop.permute.xlu0 %1599 }
0x1338   :  { %2230 = vmatmul.mubr.msk.f32.vlgmr.msra.gmra.mrb[16].mxu0 %vm194_vm6, %v1600_v29 }
0x1339   :  { %2312 = vmatpush3.bf16.msra.mxu0 %v2548_v14  ;;  %2243 = vmatprep.mubr.msk.f32.mxu0 %vm2460_vm0, %v2461_v4 }
0x134b   :  { %v1498_v39 = vpop.permute.xlu0 %1497 }
0x134c   :  { %2223 = vmatmul.mubr.msk.f32.vlgmr.msra.gmra.mrb[16].mxu1 %vm194_vm6, %v1498_v39 }
0x134d   :  { %2309 = vmatpush3.bf16.msra.mxu1 %v2535_v9  ;;  %2236 = vmatprep.mubr.msk.f32.mxu1 %vm2460_vm0, %v2461_v4 }
0x134e   :  { %2313 = vmatprep.subr.bf16.mxu1 %v2459_v0 }
0x140b   :  { %v1669_v47 = vpop.f32.mrb[16].mxu0 }
0x140c   :  { %v2231_v45 = vpop.f32.mrb[17].mxu0  ;;  %1674 = vrot.lane.b32.xlu1 %v1669_v47, %s2462_s14 }
0x141f   :  { %v1567_v50 = vpop.f32.mrb[16].mxu1 }
0x1420   :  { %v1571_v14 = vadd.f32 %v1567_v50, %v2615_v44  ;;  %v2224_v53 = vpop.f32.mrb[17].mxu1 }
0x1422   :  { %2427 = vtanh.f32 %v1571_v14  ;;  %v2040_v55 = vmul.f32 -1.442695, %v1571_v14 }
0x142c   :  { %v2428_v54 = vpop.eup %2427 }
0x142d   :  { %1581 = vrot.lane.b32.xlu1 %v2428_v54, %s2464_s1 }
0x147e   :  { %v1675_v36 = vpop.permute.xlu1 %1674 }
0x147f   :  { %v1677_v9 = vadd.f32 %v1675_v36, %v2598_v27 }
0x1481   :  { %2429 = vtanh.f32 %v1677_v9  ;;  %v2042_v61 = vmul.f32 -1.442695, %v1677_v9 }
0x1482   :  { %2431 = vpow2.f32 %v2040_v55 }
0x148b   :  { %v2430_v52 = vpop.eup %2429 }
0x148c   :  { %1687 = vrot.lane.b32.xlu0 %v2430_v52, %s2464_s1  ;;  %v2432_v57 = vpop.eup %2431 }
0x148d   :  { %v1575_v58 = vadd.f32 1.0, %v2432_v57 }
0x148f   :  { %2433 = vrcp.f32 %v1575_v58 }
0x1490   :  { %2435 = vpow2.f32 %v2042_v61  ;;  %v2317_v61 = vpack.c.bf16 %v1922_v18, %v1921_v16 }
0x1499   :  { %v2434_v51 = vpop.eup %2433 }
0x149a   :  { %v2436_v62 = vpop.eup %2435  ;;  %v1579_v8 = vmul.f32 %v2434_v51, %v1389_v6 }
0x149b   :  { %v1681_v5 = vadd.f32 1.0, %v2436_v62 }
0x149d   :  { %2437 = vrcp.f32 %v1681_v5 }
0x149f   :  { %v1582_v60 = vpop.permute.xlu1 %1581 }
0x14a0   :  { %v1584_v44 = vmul.f32 %v2434_v51, %v1582_v60  ;;  %v1920_v60 = vld [vmem:[%s3005_s6 + $0x8] sm:$0xff] }
0x14a2   :  { %1586 = vrot.lane.b32.xlu1 %v1584_v44, %s2465_s16 }
0x14a7   :  { %v2438_v27 = vpop.eup %2437 }
0x14a8   :  { %v1685_v17 = vmul.f32 %v2438_v27, %v2940_v7 }
0x14fe   :  { %v1688_v59 = vpop.permute.xlu0 %1687 }
0x14ff   :  { %v1690_v1 = vmul.f32 %v2438_v27, %v1688_v59 }
0x1501   :  { %1692 = vrot.lane.b32.xlu0 %v1690_v1, %s2465_s16 }
0x1514   :  { %v1587_v12 = vpop.permute.xlu1 %1586 }
0x1515   :  { %v1589_v13 = vadd.f32 %v1587_v12, %v1579_v8 }
0x1517   :  { %2439 = vtanh.f32 %v1589_v13  ;;  %v1597_v49 = vsel %vm629_vm8, %v1589_v13, %v1389_v6 }
0x1521   :  { %v2440_v2 = vpop.eup %2439 }
0x1522   :  { %1592 = vrot.lane.b32.xlu1 %v2440_v2, %s2465_s16 }
0x1573   :  { %v1693_v35 = vpop.permute.xlu0 %1692 }
0x1574   :  { %v1695_v3 = vadd.f32 %v1693_v35, %v1685_v17 }
0x1576   :  { %2441 = vtanh.f32 %v1695_v3  ;;  %v1703_v55 = vsel %vm517_vm10, %v1695_v3, %v2940_v7 }
0x1580   :  { %v2442_v48 = vpop.eup %2441 }
0x1581   :  { %1698 = vrot.lane.b32.xlu0 %v2442_v48, %s2465_s16 }
0x1594   :  { %v1593_v19 = vpop.permute.xlu1 %1592 }
0x1595   :  { %v1595_v20 = vmul.f32 %v2434_v51, %v1593_v19  ;;  %v1919_v51 = vld [vmem:[%s3005_s6] sm:$0xff] }
0x1596   :  { %v2314_v44 = vpack.c.bf16 %v1920_v60, %v1919_v51 }
0x1597   :  { %v1596_v21 = vsel %vm629_vm8, %v1595_v20, %v1388_v37 }
0x1598   :  { %1705 = vrot.lane.b32.xlu1 %v1596_v21, %s2466_s0 }
0x15f3   :  { %v1699_v38 = vpop.permute.xlu0 %1698 }
0x15f4   :  { %v1701_v22 = vmul.f32 %v2438_v27, %v1699_v38 }
0x15f6   :  { %v2950_v11 = vsel %vm517_vm10, %v1701_v22, %v2910_v46 }
0x15f7   :  { %1806 = vrot.lane.b32.xlu0 %v2950_v11, %s2467_s17 }
0x160a   :  { %v1706_v23 = vpop.permute.xlu1 %1705 }
0x160b   :  { %2237 = vmatmul.mubr.msk.f32.vlgmr.msra.gmra.mrb[18].mxu1 %vm194_vm6, %v1706_v23 }
0x160c   :  { %2254 = vmatprep.mubr.msk.f32.mxu1 %vm2460_vm0, %v2461_v4  ;;  %2315 = vmatpush3.bf16.msra.mxu1 %v2314_v44 }
0x160d   :  { %2316 = vmatprep.subr.bf16.mxu1 %v2459_v0  ;;  %v2047_v0 = vld [vmem:[%s3006_s7] ss:$0 sm:$0xff] }
0x1610   :  { %2318 = vmatpush3.bf16.msra.mxu1 %v2317_v61 }
0x1669   :  { %v1807_v24 = vpop.permute.xlu0 %1806 }
0x166a   :  { %2244 = vmatmul.mubr.msk.f32.vlgmr.msra.gmra.mrb[18].mxu0 %vm194_vm6, %v1807_v24 }
0x16de   :  { %v1775_v25 = vpop.f32.mrb[18].mxu1 }
0x16df   :  { %v1779_v33 = vadd.f32 %v1775_v25, %v2613_v42  ;;  %v2238_v26 = vpop.f32.mrb[19].mxu1 }
0x16e1   :  { %2443 = vtanh.f32 %v1779_v33  ;;  %v2044_v40 = vmul.f32 -1.442695, %v1779_v33 }
0x16e3   :  { %2445 = vpow2.f32 %v2044_v40 }
0x16eb   :  { %v2444_v28 = vpop.eup %2443 }
0x16ec   :  { %1789 = vrot.lane.b32.xlu1 %v2444_v28, %s2464_s1 }
0x16ed   :  { %v2446_v43 = vpop.eup %2445 }
0x16ee   :  { %v1783_v63 = vadd.f32 1.0, %v2446_v43 }
0x16f0   :  { %2447 = vrcp.f32 %v1783_v63 }
0x16fa   :  { %v2448_v4 = vpop.eup %2447 }
0x16fb   :  { %v1787_v37 = vmul.f32 %v2448_v4, %v1597_v49 }
0x173d   :  { %v1876_v32 = vpop.f32.mrb[18].mxu0 }
0x173e   :  { %1881 = vrot.lane.b32.xlu0 %v1876_v32, %s2462_s14  ;;  %v2245_v34 = vpop.f32.mrb[19].mxu0 }
0x175e   :  { %v1790_v15 = vpop.permute.xlu1 %1789 }
0x175f   :  { %v1792_v41 = vmul.f32 %v2448_v4, %v1790_v15 }
0x1761   :  { %1794 = vrot.lane.b32.xlu1 %v1792_v41, %s2465_s16 }
0x17b0   :  { %v1882_v42 = vpop.permute.xlu0 %1881 }
0x17b1   :  { %v1884_v46 = vadd.f32 %v1882_v42, %v2600_v30 }
0x17b3   :  { %2449 = vtanh.f32 %v1884_v46  ;;  %v2046_v45 = vmul.f32 -1.442695, %v1884_v46 }
0x17bd   :  { %v2450_v31 = vpop.eup %2449 }
0x17be   :  { %1894 = vrot.lane.b32.xlu0 %v2450_v31, %s2464_s1 }
0x17d3   :  { %v1795_v29 = vpop.permute.xlu1 %1794 }
0x17d4   :  { %v1797_v39 = vadd.f32 %v1795_v29, %v1787_v37 }
0x17d6   :  { %2451 = vtanh.f32 %v1797_v39 }
0x17d7   :  { %2453 = vpow2.f32 %v2046_v45 }
0x17e0   :  { %v2452_v47 = vpop.eup %2451 }
0x17e1   :  { %1800 = vrot.lane.b32.xlu1 %v2452_v47, %s2465_s16  ;;  %v2454_v50 = vpop.eup %2453 }
0x17e2   :  { %v1888_v14 = vadd.f32 1.0, %v2454_v50 }
0x17e4   :  { %2455 = vrcp.f32 %v1888_v14 }
0x17ee   :  { %v2456_v30 = vpop.eup %2455 }
0x17ef   :  { %v1892_v52 = vmul.f32 %v2456_v30, %v1703_v55 }
0x1830   :  { %v1895_v53 = vpop.permute.xlu0 %1894 }
0x1831   :  { %v1897_v54 = vmul.f32 %v2456_v30, %v1895_v53 }
0x1833   :  { %1899 = vrot.lane.b32.xlu0 %v1897_v54, %s2465_s16 }
0x1853   :  { %v1801_v36 = vpop.permute.xlu1 %1800 }
0x1854   :  { %v1803_v56 = vmul.f32 %v2448_v4, %v1801_v36 }
0x1856   :  { %v1804_v9 = vsel %vm405_vm5, %v1803_v56, %v1596_v21 }
0x1857   :  { %1911 = vrot.lane.b32.xlu1 %v1804_v9, %s2466_s0 }
0x18a5   :  { %v1900_v57 = vpop.permute.xlu0 %1899 }
0x18a6   :  { %v1902_v58 = vadd.f32 %v1900_v57, %v1892_v52 }
0x18a8   :  { %2457 = vtanh.f32 %v1902_v58 }
0x18b2   :  { %v2458_v62 = vpop.eup %2457 }
0x18b3   :  { %1905 = vrot.lane.b32.xlu0 %v2458_v62, %s2465_s16 }
0x18c9   :  { %v1912_v1 = vpop.permute.xlu1 %1911 }
0x1925   :  { %v1906_v5 = vpop.permute.xlu0 %1905 }
0x1926   :  { %v1908_v27 = vmul.f32 %v2456_v30, %v1906_v5 }
0x1928   :  { %v1909_v59 = vsel %vm298_vm4, %v1908_v27, %v2950_v11 }
0x1929   :  { %1915 = vrot.lane.b32.xlu0 %v1909_v59, %s2468_s23 }
0x199b   :  { %v1916_v6 = vpop.permute.xlu0 %1915 }
0x199c   :  { %v1918_v8 = vsel %vm194_vm6, %v1912_v1, %v1916_v6 }
0x199d   :  { %2255 = vmatmul.mubr.msk.f32.vlgmr.msra.gmra.mrb[20].mxu1 %vm49_vm1, %v1918_v8 }
0x1a70   :  { %v1999_v12 = vpop.f32.mrb[20].mxu1 }
0x1a71   :  { %v2000_v13 = vadd.f32 %v2047_v0, %v1999_v12  ;;  %v2256_v2 = vpop.f32.mrb[21].mxu1 }
0x1a73   :  { %2003 = vst [vmem:[%s3007_s8] sm:$0xff] %v2000_v13 }

</bundles_post_ra>
